<compile_context>
chip_gen: v6e
topology: v6e:2x2x1
jax: 0.10.0
libtpu: 0.0.40
codegen_flags: <defaults>
</compile_context>

<pallas_src>
import functools

import jax
import jax.numpy as jnp
from jax.experimental import pallas as pl
from jax.experimental.pallas import tpu as pltpu


# ----------------------------- kernel ---------------------------------------


def _mlp_kernel(n_blocks, has_output, x_ref, *refs):
    """Fused MLP over one (TILE_B, d_in) tile of the batch.

    refs layout: [w_0, b_0, ..., w_{n-1}, b_{n-1}, (w_out, b_out)?, o_ref]
    Weights are pre-transposed to (d_in, d_out) bf16; biases are (1, d) f32.
    The final layer's weight/bias are pre-padded to a lane-dense (mult-of-128)
    output width.
    """
    o_ref = refs[-1]
    p = refs[:-1]

    h = x_ref[...]  # bf16 (cast in wrapper); MXU operands bf16, accumulation f32.
    for i in range(n_blocks):
        w = p[2 * i][...]          # (d_prev, d_next) bf16
        b = p[2 * i + 1][...]      # (1, d_next) f32
        acc = jnp.dot(h, w, preferred_element_type=jnp.float32) + b
        h_f32 = jnp.maximum(acc, 0.0)      # ReLU; eval-mode Dropout == identity
        if (i == n_blocks - 1) and not has_output:
            # Store the final activation directly in f32 (no bf16 round-trip).
            o_ref[...] = h_f32.astype(o_ref.dtype)
            return
        h = h_f32.astype(jnp.bfloat16)

    # Output projection (lane-dense, padded width).
    w = p[2 * n_blocks][...]
    b = p[2 * n_blocks + 1][...]
    out = jnp.dot(h, w, preferred_element_type=jnp.float32) + b
    o_ref[...] = out.astype(o_ref.dtype)


# ------------------------- parameter preparation ----------------------------


def _round_up(n, m):
    return ((n + m - 1) // m) * m


def prepare_mlp_params(block_weights, block_biases, out_weight=None, out_bias=None):
    """One-time glue (call at parameter-load time, NOT per forward):

    * torch-layout (out, in) weights -> (in, out) bf16
    * biases -> (1, d) f32
    * the FINAL layer's weight/bias zero-padded to a multiple of 128 output
      lanes (lane-dense stores; wrapper slices the padding off).
    """
    has_output = out_weight is not None
    n_blocks = len(block_weights)

    ws, bs = [], []
    for w, b in zip(block_weights, block_biases):
        ws.append(jnp.asarray(w, jnp.float32).T.astype(jnp.bfloat16))
        bs.append(jnp.asarray(b, jnp.float32)[None, :])
    if has_output:
        ws.append(jnp.asarray(out_weight, jnp.float32).T.astype(jnp.bfloat16))
        bs.append(jnp.asarray(out_bias, jnp.float32)[None, :])

    d_out_true = int(ws[-1].shape[1])
    d_out_pad = _round_up(d_out_true, 128)
    if d_out_pad != d_out_true:
        pad = d_out_pad - d_out_true
        ws[-1] = jnp.pad(ws[-1], ((0, 0), (0, pad)))   # zero columns -> zero outputs
        bs[-1] = jnp.pad(bs[-1], ((0, 0), (0, pad)))

    params = []
    for w, b in zip(ws, bs):
        params.extend((w, b))

    return {
        "params": tuple(params),
        "n_blocks": n_blocks,
        "has_output": has_output,
        "d_out": d_out_true,
        "d_out_padded": d_out_pad,
    }


# ------------------------------ wrapper --------------------------------------


def _num_tensorcores():
    """2 for chips exposing two TensorCores per device (v4/v5p/v7x), else 1."""
    try:
        kind = jax.devices()[0].device_kind.lower()
    except Exception:
        return 1
    return 2 if ("v7" in kind or "v4" in kind or "v5p" in kind) else 1


def _vmem_budget_bytes():
    try:
        cap = int(pltpu.get_tpu_info().vmem_capacity_bytes)
    except Exception:
        cap = 64 << 20          # conservative default (v7x per-TC VMEM)
    return int(cap * 0.7), cap


def _choose_tile_b(B, per_row_bytes, param_bytes, budget, min_tiles):
    """Largest batch tile that fits the VMEM budget and yields >= min_tiles steps."""

    def fits(t):
        return param_bytes + t * per_row_bytes <= budget

    if B <= 128:
        return B                                   # full-dim block is always legal
    if min_tiles <= 1 and B <= 1024 and fits(B):
        return B                                   # single step: no pipeline overhead
    for t in (1024, 512, 256, 128):
        if pl.cdiv(B, t) >= min_tiles and fits(t):
            return t
    # TODO(synk): switch to layer-streamed weights when even a 128-row tile
    #             plus all resident params exceeds the VMEM budget.
    return 128


def _param_spec(shape, use_buffered):
    """Constant-index (VMEM-resident) spec; single-buffered when supported."""
    if use_buffered:
        try:
            return pl.BlockSpec(shape, lambda i: (0, 0), pipeline_mode=pl.Buffered(1))
        except TypeError:
            pass
    return pl.BlockSpec(shape, lambda i: (0, 0))


def mlp_forward(x, prepared):
    """x: (B, d_in) array; prepared: output of prepare_mlp_params."""
    params = prepared["params"]
    n_blocks = prepared["n_blocks"]
    has_output = prepared["has_output"]
    d_out = prepared["d_out"]
    d_pad = prepared["d_out_padded"]

    B, d_in = x.shape
    x_bf = x if x.dtype == jnp.bfloat16 else x.astype(jnp.bfloat16)

    # --- VMEM accounting / tiling -------------------------------------------
    param_bytes = sum(int(p.size) * p.dtype.itemsize for p in params)
    widths = [d_in] + [int(p.shape[1]) for p in params[0::2]]
    max_w = max(widths)
    # double-buffered bf16 x tile + f32 out tile, plus ~3 f32 activation temps per row
    per_row = 2 * (d_in * 2 + d_pad * 4) + 3 * max_w * 4

    budget, vmem_cap = _vmem_budget_bytes()
    min_tiles = 2 if _num_tensorcores() >= 2 else 1
    tile_b = _choose_tile_b(B, per_row, param_bytes, budget, min_tiles)
    grid = (pl.cdiv(B, tile_b),)

    need = param_bytes + tile_b * per_row
    vmem_limit = int(min(100 << 20, int(0.95 * vmem_cap),
                         max(budget, 2 * need, 16 << 20)))

    # --- specs / cost hint ----------------------------------------------------
    out_specs = pl.BlockSpec((tile_b, d_pad), lambda i: (i, 0))
    out_shape = jax.ShapeDtypeStruct((B, d_pad), jnp.float32)

    flops = 0
    d_prev = d_in
    for w in params[0::2]:
        d_next = int(w.shape[1])
        flops += 2 * B * d_prev * d_next
        d_prev = d_next
    cost = pl.CostEstimate(
        flops=int(flops),
        transcendentals=0,
        bytes_accessed=int(B * d_in * 2 + param_bytes + B * d_pad * 4),
    )

    kernel = functools.partial(_mlp_kernel, n_blocks, has_output)
    cparams = pltpu.CompilerParams(
        dimension_semantics=("parallel",),   # shards batch tiles across TCs on 2-TC chips
        vmem_limit_bytes=vmem_limit,
    )

    def _run(use_buffered):
        in_specs = [pl.BlockSpec((tile_b, d_in), lambda i: (i, 0))]
        for prm in params:
            in_specs.append(_param_spec(prm.shape, use_buffered))
        fn = pl.pallas_call(
            kernel,
            out_shape=out_shape,
            grid=grid,
            in_specs=in_specs,
            out_specs=out_specs,
            compiler_params=cparams,
            cost_estimate=cost,
        )
        return fn(x_bf, *params)

    try:
        out = _run(True)
    except Exception:
        # Fall back to default (double) buffering if Buffered(1) is rejected.
        out = _run(False)

    return out[:, :d_out] if d_pad != d_out else out


# ------------------------------- demo ----------------------------------------


def _init_linear(key, d_out, d_in):
    """Deterministic init mimicking torch.nn.Linear (uniform(-1/sqrt(fan_in), +))."""
    kw, kb = jax.random.split(key)
    bound = 1.0 / jnp.sqrt(jnp.float32(d_in))
    w = jax.random.uniform(kw, (d_out, d_in), jnp.float32, -bound, bound)
    b = jax.random.uniform(kb, (d_out,), jnp.float32, -bound, bound)
    return w, b


if __name__ == "__main__":
    # MLP(d_in=32, d_out=16, n_blocks=2, d_block=64, dropout=0.1, activation='ReLU')
    B, d_in, d_block, d_out, n_blocks = 256, 32, 64, 16, 2

    root = jax.random.PRNGKey(0)
    keys = jax.random.split(root, n_blocks + 2)

    block_ws, block_bs = [], []
    d_prev = d_in
    for i in range(n_blocks):
        w, b = _init_linear(keys[i], d_block, d_prev)
        block_ws.append(w)
        block_bs.append(b)
        d_prev = d_block
    w_out, b_out = _init_linear(keys[n_blocks], d_out, d_block)

    x = jax.random.normal(keys[n_blocks + 1], (B, d_in), jnp.float32)

    # One-time parameter prep (transpose, bf16 cast, lane-dense padding of last layer).
    prepared = prepare_mlp_params(block_ws, block_bs, w_out, b_out)
    y = jax.block_until_ready(mlp_forward(x, prepared))

    # f32 reference of the original module semantics (eval-mode dropout = identity).
    h = x
    for w, b in zip(block_ws, block_bs):
        h = jnp.maximum(h @ w.T + b, 0.0)
    y_ref = h @ w_out.T + b_out

    assert y.shape == (B, d_out), y.shape
    # bf16 MXU operands (f32 accumulation) -> looser tolerance than pure f32.
    assert jnp.allclose(y, y_ref, atol=5e-2, rtol=5e-2), float(jnp.max(jnp.abs(y - y_ref)))

    # d_out=None path (no output projection).
    prepared_nb = prepare_mlp_params(block_ws, block_bs)
    y2 = jax.block_until_ready(mlp_forward(x, prepared_nb))
    assert y2.shape == (B, d_block), y2.shape
    assert jnp.allclose(y2, h, atol=5e-2, rtol=5e-2), float(jnp.max(jnp.abs(y2 - h)))

    print("KERNEL_OK")
</pallas_src>

<mosaic_0001>
module attributes {stable_mosaic.version = 11 : i64} {
  func.func @_mlp_kernel(%arg0: i32, %arg1: memref<256x32xbf16, #tpu.memory_space<vmem>>, %arg2: memref<32x64xbf16, #tpu.memory_space<vmem>>, %arg3: memref<1x64xf32, #tpu.memory_space<vmem>>, %arg4: memref<64x64xbf16, #tpu.memory_space<vmem>>, %arg5: memref<1x64xf32, #tpu.memory_space<vmem>>, %arg6: memref<64x128xbf16, #tpu.memory_space<vmem>>, %arg7: memref<1x128xf32, #tpu.memory_space<vmem>>, %arg8: memref<256x128xf32, #tpu.memory_space<vmem>>) attributes {dimension_semantics = [#tpu.dimension_semantics<parallel>], iteration_bounds = array<i64: 1>, scalar_prefetch = 0 : i64, scratch_operands = 0 : i64, tpu.core_type = #tpu.core_type<tc>, window_params = [{transform_indices = @transform_0, window_bounds = array<i64: 256, 32>}, {pipeline_mode = #tpu.pipeline_mode<synchronous>, transform_indices = @transform_1, window_bounds = array<i64: 32, 64>}, {pipeline_mode = #tpu.pipeline_mode<synchronous>, transform_indices = @transform_2, window_bounds = array<i64: 1, 64>}, {pipeline_mode = #tpu.pipeline_mode<synchronous>, transform_indices = @transform_3, window_bounds = array<i64: 64, 64>}, {pipeline_mode = #tpu.pipeline_mode<synchronous>, transform_indices = @transform_4, window_bounds = array<i64: 1, 64>}, {pipeline_mode = #tpu.pipeline_mode<synchronous>, transform_indices = @transform_5, window_bounds = array<i64: 64, 128>}, {pipeline_mode = #tpu.pipeline_mode<synchronous>, transform_indices = @transform_6, window_bounds = array<i64: 1, 128>}, {transform_indices = @transform_7, window_bounds = array<i64: 256, 128>}]} {
    %c0 = arith.constant 0 : index
    %c0_0 = arith.constant 0 : index
    %0 = vector.load %arg1[%c0, %c0_0] : memref<256x32xbf16, #tpu.memory_space<vmem>>, vector<256x32xbf16>
    %c0_1 = arith.constant 0 : index
    %c0_2 = arith.constant 0 : index
    %1 = vector.load %arg2[%c0_1, %c0_2] : memref<32x64xbf16, #tpu.memory_space<vmem>>, vector<32x64xbf16>
    %c0_3 = arith.constant 0 : index
    %c0_4 = arith.constant 0 : index
    %2 = vector.load %arg3[%c0_3, %c0_4] : memref<1x64xf32, #tpu.memory_space<vmem>>, vector<1x64xf32>
    %cst = arith.constant dense<0.000000e+00> : vector<256x64xf32>
    %3 = tpu.matmul %0, %1, %cst {dimension_numbers = #tpu.dot_dimension_numbers<[1], [0], [0], [1], [0, 0, 1, 1], [], []>} : vector<256x32xbf16>, vector<32x64xbf16>, vector<256x64xf32> -> vector<256x64xf32>
    %4 = vector.broadcast %2 : vector<1x64xf32> to vector<256x64xf32>
    %5 = arith.addf %3, %4 : vector<256x64xf32>
    %cst_5 = arith.constant 0.000000e+00 : f32
    %6 = vector.broadcast %cst_5 : f32 to vector<256x64xf32>
    %7 = arith.maximumf %5, %6 : vector<256x64xf32>
    %8 = arith.truncf %7 : vector<256x64xf32> to vector<256x64xbf16>
    %c0_6 = arith.constant 0 : index
    %c0_7 = arith.constant 0 : index
    %9 = vector.load %arg4[%c0_6, %c0_7] : memref<64x64xbf16, #tpu.memory_space<vmem>>, vector<64x64xbf16>
    %c0_8 = arith.constant 0 : index
    %c0_9 = arith.constant 0 : index
    %10 = vector.load %arg5[%c0_8, %c0_9] : memref<1x64xf32, #tpu.memory_space<vmem>>, vector<1x64xf32>
    %cst_10 = arith.constant dense<0.000000e+00> : vector<256x64xf32>
    %11 = tpu.matmul %8, %9, %cst_10 {dimension_numbers = #tpu.dot_dimension_numbers<[1], [0], [0], [1], [0, 0, 1, 1], [], []>} : vector<256x64xbf16>, vector<64x64xbf16>, vector<256x64xf32> -> vector<256x64xf32>
    %12 = vector.broadcast %10 : vector<1x64xf32> to vector<256x64xf32>
    %13 = arith.addf %11, %12 : vector<256x64xf32>
    %cst_11 = arith.constant 0.000000e+00 : f32
    %14 = vector.broadcast %cst_11 : f32 to vector<256x64xf32>
    %15 = arith.maximumf %13, %14 : vector<256x64xf32>
    %16 = arith.truncf %15 : vector<256x64xf32> to vector<256x64xbf16>
    %c0_12 = arith.constant 0 : index
    %c0_13 = arith.constant 0 : index
    %17 = vector.load %arg6[%c0_12, %c0_13] : memref<64x128xbf16, #tpu.memory_space<vmem>>, vector<64x128xbf16>
    %c0_14 = arith.constant 0 : index
    %c0_15 = arith.constant 0 : index
    %18 = vector.load %arg7[%c0_14, %c0_15] : memref<1x128xf32, #tpu.memory_space<vmem>>, vector<1x128xf32>
    %cst_16 = arith.constant dense<0.000000e+00> : vector<256x128xf32>
    %19 = tpu.matmul %16, %17, %cst_16 {dimension_numbers = #tpu.dot_dimension_numbers<[1], [0], [0], [1], [0, 0, 1, 1], [], []>} : vector<256x64xbf16>, vector<64x128xbf16>, vector<256x128xf32> -> vector<256x128xf32>
    %20 = vector.broadcast %18 : vector<1x128xf32> to vector<256x128xf32>
    %21 = arith.addf %19, %20 : vector<256x128xf32>
    %c0_17 = arith.constant 0 : index
    %c0_18 = arith.constant 0 : index
    %22 = vector.load %arg8[%c0_17, %c0_18] : memref<256x128xf32, #tpu.memory_space<vmem>>, vector<256x128xf32>
    tpu.vector_store %arg8[%c0_17, %c0_18], %21 {strides = array<i32>} : memref<256x128xf32, #tpu.memory_space<vmem>>, vector<256x128xf32>,
    return
  }
  func.func @transform_0(%arg0: i32) -> (i32, i32) {
    %c0_i32 = arith.constant 0 : i32
    %c0_i32_0 = arith.constant 0 : i32
    return %arg0, %c0_i32 : i32, i32
  }
  func.func @transform_1(%arg0: i32) -> (i32, i32) {
    %c0_i32 = arith.constant 0 : i32
    %c0_i32_0 = arith.constant 0 : i32
    %c0_i32_1 = arith.constant 0 : i32
    return %c0_i32, %c0_i32_0 : i32, i32
  }
  func.func @transform_2(%arg0: i32) -> (i32, i32) {
    %c0_i32 = arith.constant 0 : i32
    %c0_i32_0 = arith.constant 0 : i32
    %c0_i32_1 = arith.constant 0 : i32
    return %c0_i32, %c0_i32_0 : i32, i32
  }
  func.func @transform_3(%arg0: i32) -> (i32, i32) {
    %c0_i32 = arith.constant 0 : i32
    %c0_i32_0 = arith.constant 0 : i32
    %c0_i32_1 = arith.constant 0 : i32
    return %c0_i32, %c0_i32_0 : i32, i32
  }
  func.func @transform_4(%arg0: i32) -> (i32, i32) {
    %c0_i32 = arith.constant 0 : i32
    %c0_i32_0 = arith.constant 0 : i32
    %c0_i32_1 = arith.constant 0 : i32
    return %c0_i32, %c0_i32_0 : i32, i32
  }
  func.func @transform_5(%arg0: i32) -> (i32, i32) {
    %c0_i32 = arith.constant 0 : i32
    %c0_i32_0 = arith.constant 0 : i32
    %c0_i32_1 = arith.constant 0 : i32
    return %c0_i32, %c0_i32_0 : i32, i32
  }
  func.func @transform_6(%arg0: i32) -> (i32, i32) {
    %c0_i32 = arith.constant 0 : i32
    %c0_i32_0 = arith.constant 0 : i32
    %c0_i32_1 = arith.constant 0 : i32
    return %c0_i32, %c0_i32_0 : i32, i32
  }
  func.func @transform_7(%arg0: i32) -> (i32, i32) {
    %c0_i32 = arith.constant 0 : i32
    %c0_i32_0 = arith.constant 0 : i32
    return %arg0, %c0_i32 : i32, i32
  }
}

module attributes {stable_mosaic.version = 11 : i64} {
  func.func @_mlp_kernel(%arg0: i32, %arg1: memref<256x32xbf16, #tpu.memory_space<vmem>>, %arg2: memref<32x64xbf16, #tpu.memory_space<vmem>>, %arg3: memref<1x64xf32, #tpu.memory_space<vmem>>, %arg4: memref<64x64xbf16, #tpu.memory_space<vmem>>, %arg5: memref<1x64xf32, #tpu.memory_space<vmem>>, %arg6: memref<64x128xbf16, #tpu.memory_space<vmem>>, %arg7: memref<1x128xf32, #tpu.memory_space<vmem>>, %arg8: memref<256x128xf32, #tpu.memory_space<vmem>>) attributes {dimension_semantics = [#tpu.dimension_semantics<parallel>], iteration_bounds = array<i64: 1>, scalar_prefetch = 0 : i64, scratch_operands = 0 : i64, tpu.core_type = #tpu.core_type<tc>, window_params = [{transform_indices = @transform_0, window_bounds = array<i64: 256, 32>}, {pipeline_mode = #tpu.pipeline_mode<synchronous>, transform_indices = @transform_1, window_bounds = array<i64: 32, 64>}, {pipeline_mode = #tpu.pipeline_mode<synchronous>, transform_indices = @transform_2, window_bounds = array<i64: 1, 64>}, {pipeline_mode = #tpu.pipeline_mode<synchronous>, transform_indices = @transform_3, window_bounds = array<i64: 64, 64>}, {pipeline_mode = #tpu.pipeline_mode<synchronous>, transform_indices = @transform_4, window_bounds = array<i64: 1, 64>}, {pipeline_mode = #tpu.pipeline_mode<synchronous>, transform_indices = @transform_5, window_bounds = array<i64: 64, 128>}, {pipeline_mode = #tpu.pipeline_mode<synchronous>, transform_indices = @transform_6, window_bounds = array<i64: 1, 128>}, {transform_indices = @transform_7, window_bounds = array<i64: 256, 128>}]} {
    %c0 = arith.constant 0 : index
    %c0_0 = arith.constant 0 : index
    %0 = vector.load %arg1[%c0, %c0_0] : memref<256x32xbf16, #tpu.memory_space<vmem>>, vector<256x32xbf16>
    %c0_1 = arith.constant 0 : index
    %c0_2 = arith.constant 0 : index
    %1 = vector.load %arg2[%c0_1, %c0_2] : memref<32x64xbf16, #tpu.memory_space<vmem>>, vector<32x64xbf16>
    %c0_3 = arith.constant 0 : index
    %c0_4 = arith.constant 0 : index
    %2 = vector.load %arg3[%c0_3, %c0_4] : memref<1x64xf32, #tpu.memory_space<vmem>>, vector<1x64xf32>
    %cst = arith.constant dense<0.000000e+00> : vector<256x64xf32>
    %3 = tpu.matmul %0, %1, %cst {dimension_numbers = #tpu.dot_dimension_numbers<[1], [0], [0], [1], [0, 0, 1, 1], [], []>} : vector<256x32xbf16>, vector<32x64xbf16>, vector<256x64xf32> -> vector<256x64xf32>
    %4 = vector.broadcast %2 : vector<1x64xf32> to vector<256x64xf32>
    %5 = arith.addf %3, %4 : vector<256x64xf32>
    %cst_5 = arith.constant 0.000000e+00 : f32
    %6 = vector.broadcast %cst_5 : f32 to vector<256x64xf32>
    %7 = arith.maximumf %5, %6 : vector<256x64xf32>
    %8 = arith.truncf %7 : vector<256x64xf32> to vector<256x64xbf16>
    %c0_6 = arith.constant 0 : index
    %c0_7 = arith.constant 0 : index
    %9 = vector.load %arg4[%c0_6, %c0_7] : memref<64x64xbf16, #tpu.memory_space<vmem>>, vector<64x64xbf16>
    %c0_8 = arith.constant 0 : index
    %c0_9 = arith.constant 0 : index
    %10 = vector.load %arg5[%c0_8, %c0_9] : memref<1x64xf32, #tpu.memory_space<vmem>>, vector<1x64xf32>
    %cst_10 = arith.constant dense<0.000000e+00> : vector<256x64xf32>
    %11 = tpu.matmul %8, %9, %cst_10 {dimension_numbers = #tpu.dot_dimension_numbers<[1], [0], [0], [1], [0, 0, 1, 1], [], []>} : vector<256x64xbf16>, vector<64x64xbf16>, vector<256x64xf32> -> vector<256x64xf32>
    %12 = vector.broadcast %10 : vector<1x64xf32> to vector<256x64xf32>
    %13 = arith.addf %11, %12 : vector<256x64xf32>
    %cst_11 = arith.constant 0.000000e+00 : f32
    %14 = vector.broadcast %cst_11 : f32 to vector<256x64xf32>
    %15 = arith.maximumf %13, %14 : vector<256x64xf32>
    %16 = arith.truncf %15 : vector<256x64xf32> to vector<256x64xbf16>
    %c0_12 = arith.constant 0 : index
    %c0_13 = arith.constant 0 : index
    %17 = vector.load %arg6[%c0_12, %c0_13] : memref<64x128xbf16, #tpu.memory_space<vmem>>, vector<64x128xbf16>
    %c0_14 = arith.constant 0 : index
    %c0_15 = arith.constant 0 : index
    %18 = vector.load %arg7[%c0_14, %c0_15] : memref<1x128xf32, #tpu.memory_space<vmem>>, vector<1x128xf32>
    %cst_16 = arith.constant dense<0.000000e+00> : vector<256x128xf32>
    %19 = tpu.matmul %16, %17, %cst_16 {dimension_numbers = #tpu.dot_dimension_numbers<[1], [0], [0], [1], [0, 0, 1, 1], [], []>} : vector<256x64xbf16>, vector<64x128xbf16>, vector<256x128xf32> -> vector<256x128xf32>
    %20 = vector.broadcast %18 : vector<1x128xf32> to vector<256x128xf32>
    %21 = arith.addf %19, %20 : vector<256x128xf32>
    %c0_17 = arith.constant 0 : index
    %c0_18 = arith.constant 0 : index
    %22 = vector.load %arg8[%c0_17, %c0_18] : memref<256x128xf32, #tpu.memory_space<vmem>>, vector<256x128xf32>
    tpu.vector_store %arg8[%c0_17, %c0_18], %21 {strides = array<i32>} : memref<256x128xf32, #tpu.memory_space<vmem>>, vector<256x128xf32>,
    return
  }
  func.func @transform_0(%arg0: i32) -> (i32, i32) {
    %c0_i32 = arith.constant 0 : i32
    %c0_i32_0 = arith.constant 0 : i32
    return %arg0, %c0_i32 : i32, i32
  }
  func.func @transform_1(%arg0: i32) -> (i32, i32) {
    %c0_i32 = arith.constant 0 : i32
    %c0_i32_0 = arith.constant 0 : i32
    %c0_i32_1 = arith.constant 0 : i32
    return %c0_i32, %c0_i32_0 : i32, i32
  }
  func.func @transform_2(%arg0: i32) -> (i32, i32) {
    %c0_i32 = arith.constant 0 : i32
    %c0_i32_0 = arith.constant 0 : i32
    %c0_i32_1 = arith.constant 0 : i32
    return %c0_i32, %c0_i32_0 : i32, i32
  }
  func.func @transform_3(%arg0: i32) -> (i32, i32) {
    %c0_i32 = arith.constant 0 : i32
    %c0_i32_0 = arith.constant 0 : i32
    %c0_i32_1 = arith.constant 0 : i32
    return %c0_i32, %c0_i32_0 : i32, i32
  }
  func.func @transform_4(%arg0: i32) -> (i32, i32) {
    %c0_i32 = arith.constant 0 : i32
    %c0_i32_0 = arith.constant 0 : i32
    %c0_i32_1 = arith.constant 0 : i32
    return %c0_i32, %c0_i32_0 : i32, i32
  }
  func.func @transform_5(%arg0: i32) -> (i32, i32) {
    %c0_i32 = arith.constant 0 : i32
    %c0_i32_0 = arith.constant 0 : i32
    %c0_i32_1 = arith.constant 0 : i32
    return %c0_i32, %c0_i32_0 : i32, i32
  }
  func.func @transform_6(%arg0: i32) -> (i32, i32) {
    %c0_i32 = arith.constant 0 : i32
    %c0_i32_0 = arith.constant 0 : i32
    %c0_i32_1 = arith.constant 0 : i32
    return %c0_i32, %c0_i32_0 : i32, i32
  }
  func.func @transform_7(%arg0: i32) -> (i32, i32) {
    %c0_i32 = arith.constant 0 : i32
    %c0_i32_0 = arith.constant 0 : i32
    return %arg0, %c0_i32 : i32, i32
  }
}

</mosaic_0001>

<bundles_post_ra>
// kernel: tpu_custom_call.1
= control target key start
LH: loop header
LB: loop body
LE: loop exit
PB: predicated region body
PF: predicated region fallthrough
CT: control target
= control target key end

     0   :  { %vm163_vm0 = vcmask 261120   ;;  %s1618_s0 = inlined_call_operand.vmem [shape: bf16[256,32], index: 0, kind: input, shape index: {}]   ;;  %s1619_s1 = inlined_call_operand.vmem [shape: bf16[32,64], index: 1, kind: input, shape index: {}]   ;;  %s1620_s2 = inlined_call_operand.vmem [shape: f32[1,64], index: 2, kind: input, shape index: {}]   ;;  %s1621_s3 = inlined_call_operand.vmem [shape: bf16[64,64], index: 3, kind: input, shape index: {}]   ;;  %s1622_s4 = inlined_call_operand.vmem [shape: f32[1,64], index: 4, kind: input, shape index: {}]   ;;  %s1623_s5 = inlined_call_operand.vmem [shape: bf16[64,128], index: 5, kind: input, shape index: {}]   ;;  %s1624_s6 = inlined_call_operand.vmem [shape: f32[1,128], index: 6, kind: input, shape index: {}]   ;;  %s1625_s7 = inlined_call_operand.hbm [shape: f32[256,128], index: 7, kind: output, shape index: {}]  }
   0x1   :  { %v1272_v0 = vld [vmem:[%s1619_s1 + $0x8] sm:$0xff]   ;;  %v1273_v1 = vld [vmem:[%s1619_s1] sm:$0xff]   ;;  %v1276_v4 = vld [vmem:[%s1618_s0 + $0x10] sm:$0xff]  }
   0x2   :  { %1149 = vmatprep.subr.bf16.mxu0 %v1272_v0  ;;  %v1274_v2 = vld [vmem:[%s1618_s0] sm:$0xff]   ;;  %1265 = vmatprep.subr.bf16.mxu1 %v1272_v0  ;;  %v1275_v3 = vld [vmem:[%s1618_s0 + $0x8] sm:$0xff]   ;;  %v1284_v7 = vld [vmem:[%s1618_s0 + $0x50] sm:$0xff]  }
   0x3   :  { %1150 = vmatpush3.bf16.msra.mxu0 %v1272_v0  ;;  %1267 = vmatpush3.bf16.msra.mxu1 %v1272_v0  ;;  %v1282_v5 = vld [vmem:[%s1618_s0 + $0x40] sm:$0xff]   ;;  %v1283_v6 = vld [vmem:[%s1618_s0 + $0x48] sm:$0xff]   ;;  %v1277_v8 = vld [vmem:[%s1618_s0 + $0x18] sm:$0xff]  }
   0x4   :  { %1151 = vmatprep.subr.bf16.mxu0 %v1273_v1  ;;  %1153 = vmatprep.mubr.msk.bf16.mxu0 %vm163_vm0, %v1274_v2  ;;  %v1278_v9 = vld [vmem:[%s1618_s0 + $0x20] sm:$0xff]   ;;  %v1285_v10 = vld [vmem:[%s1618_s0 + $0x58] sm:$0xff]   ;;  %v1291_v13 = vld [vmem:[%s1621_s3 + $0x10] sm:$0xff]  }
   0x5   :  { %1266 = vmatprep.subr.bf16.mxu1 %v1273_v1  ;;  %1169 = vmatprep.mubr.msk.bf16.mxu1 %vm163_vm0, %v1282_v5  ;;  %v1286_v11 = vld [vmem:[%s1618_s0 + $0x60] sm:$0xff]   ;;  %v1290_v12 = vld [vmem:[%s1621_s3 + $0x18] sm:$0xff]   ;;  %v1279_v14 = vld [vmem:[%s1618_s0 + $0x28] sm:$0xff]  }
   0x6   :  { %v1280_v15 = vld [vmem:[%s1618_s0 + $0x30] sm:$0xff]   ;;  %v1292_v16 = vld [vmem:[%s1621_s3 + $0x8] sm:$0xff]  }
   0x7   :  { %1152 = vmatpush3.bf16.msra.mxu0 %v1273_v1  ;;  %1268 = vmatpush3.bf16.msra.mxu1 %v1273_v1 }
   0x8   :  { %1185 = vmatprep.subr.bf16.mxu1 %v1290_v12 }
   0xa   :  { %1154 = vmatmul.mubr.msk.bf16.vlgmr.msra.gmra.mxu0 %vm163_vm0, %v1275_v3  ;;  %1170 = vmatmul.mubr.msk.bf16.vlgmr.msra.gmra.mxu1 %vm163_vm0, %v1283_v6 }
   0xb   :  { %1157 = vmatprep.mubr.msk.bf16.mxu0 %vm163_vm0, %v1276_v4  ;;  %1173 = vmatprep.mubr.msk.bf16.mxu1 %vm163_vm0, %v1284_v7 }
   0xc   :  { %1186 = vmatpush3.bf16.msra.mxu1 %v1290_v12 }
   0xd   :  { %1187 = vmatprep.subr.bf16.mxu1 %v1291_v13 }
  0x12   :  { %1158 = vmatmul.mubr.msk.bf16.gmra.mxu0 %vm163_vm0, %v1277_v8  ;;  %1174 = vmatmul.mubr.msk.bf16.gmra.mxu1 %vm163_vm0, %v1285_v10 }
  0x13   :  { %1161 = vmatprep.mubr.msk.bf16.mxu0 %vm163_vm0, %v1278_v9  ;;  %1177 = vmatprep.mubr.msk.bf16.mxu1 %vm163_vm0, %v1286_v11 }
  0x14   :  { %12 = vsyncpa [#allocation3], 0  ;;  %v1287_v17 = vld [vmem:[%s1618_s0 + $0x68] sm:$0xff]   ;;  %v1288_v18 = vld [vmem:[%s1618_s0 + $0x70] sm:$0xff]   ;;  %1188 = vmatpush3.bf16.msra.mxu1 %v1291_v13  ;;  %vm460_vm1 = vcmask 523264  }
  0x15   :  { %1189 = vmatprep.subr.bf16.mxu1 %v1292_v16  ;;  %v1281_v19 = vld [vmem:[%s1618_s0 + $0x38] sm:$0xff]   ;;  %v1293_v21 = vld [vmem:[%s1621_s3] sm:$0xff]   ;;  %v1295_v23 = vld [vmem:[%s1623_s5 + $0x10] sm:$0xff]  }
  0x16   :  { %v1289_v20 = vld [vmem:[%s1618_s0 + $0x78] sm:$0xff]   ;;  %v1296_v24 = vld [vmem:[%s1623_s5 + $0x8] sm:$0xff]   ;;  %v1457_v27 = vld [vmem:[%s1620_s2] ss:$0 sm:$0xff] }
  0x17   :  { %v1294_v22 = vld [vmem:[%s1623_s5 + $0x18] sm:$0xff]  }
  0x18   :  { %1190 = vmatpush3.bf16.msra.mxu1 %v1292_v16  ;;  %1225 = vmatprep.subr.bf16.mxu0 %v1294_v22 }
  0x19   :  { %1191 = vmatprep.subr.bf16.mxu1 %v1293_v21  ;;  %1226 = vmatpush3.bf16.msra.mxu0 %v1294_v22 }
  0x1a   :  { %1162 = vmatmul.mubr.msk.bf16.gmra.mxu0 %vm163_vm0, %v1279_v14  ;;  %1178 = vmatmul.mubr.msk.bf16.gmra.mxu1 %vm163_vm0, %v1287_v17 }
  0x1b   :  { %1165 = vmatprep.mubr.msk.bf16.mxu0 %vm163_vm0, %v1280_v15  ;;  %1181 = vmatprep.mubr.msk.bf16.mxu1 %vm163_vm0, %v1288_v18 }
  0x1c   :  { %1192 = vmatpush3.bf16.msra.mxu1 %v1293_v21  ;;  %1227 = vmatprep.subr.bf16.mxu0 %v1295_v23 }
  0x1d   :  { %1228 = vmatpush3.bf16.msra.mxu0 %v1295_v23 }
  0x1e   :  { %1229 = vmatprep.subr.bf16.mxu0 %v1296_v24 }
  0x21   :  { %1230 = vmatpush3.bf16.msra.mxu0 %v1296_v24 }
  0x22   :  { %1166 = vmatmul.mubr.msk.bf16.gmra.mxu0 %vm163_vm0, %v1281_v19  ;;  %1182 = vmatmul.mubr.msk.bf16.gmra.mxu1 %vm163_vm0, %v1289_v20 }
  0xca   :  { %v1155_v25 = vpop.f32.mrf.mxu0  ;;  %v1459_v28 = vpop.f32.mrf.mxu1 }
  0xcb   :  { %v255_v33 = vadd.f32 %v1155_v25, %v1457_v27 }
  0xcc   :  { %v246_v26 = vpop.f32.mrf.mxu0  ;;  %v310_v32 = vpop.f32.mrf.mxu1 }
  0xcd   :  { %v247_v30 = vadd.f32 %v1457_v27, %v246_v26  ;;  %v375_v42 = vmax.f32 %v255_v33, 0.0  ;;  %v311_v15 = vadd.f32 %v1457_v27, %v310_v32 }
  0xce   :  { %v1156_v29 = vpop.f32.mrf.mxu0  ;;  %v1465_v36 = vpop.f32.mrf.mxu1 }
  0xcf   :  { %v258_v31 = vadd.f32 %v1156_v29, %v1457_v27  ;;  %v373_v39 = vmax.f32 %v247_v30, 0.0  ;;  %v389_v24 = vmax.f32 %v311_v15, 0.0 }
  0xd0   :  { %v249_v34 = vpop.f32.mrf.mxu0  ;;  %v313_v41 = vpop.f32.mrf.mxu1 }
  0xd1   :  { %v250_v35 = vadd.f32 %v1457_v27, %v249_v34  ;;  %v376_v37 = vmax.f32 %v258_v31, 0.0  ;;  %v314_v16 = vadd.f32 %v1457_v27, %v313_v41  ;;  %v322_v41 = vadd.f32 %v1465_v36, %v1457_v27 }
  0xd2   :  { %v1159_v38 = vpop.f32.mrf.mxu0  ;;  %v1467_v45 = vpop.f32.mrf.mxu1 }
  0xd3   :  { %v374_v40 = vmax.f32 %v250_v35, 0.0  ;;  %v406_v46 = vpack.c.bf16 %v376_v37, %v375_v42  ;;  %v271_v51 = vadd.f32 %v1159_v38, %v1457_v27  ;;  %v390_v26 = vmax.f32 %v314_v16, 0.0 }
  0xd4   :  { %v262_v43 = vpop.f32.mrf.mxu0  ;;  %v326_v50 = vpop.f32.mrf.mxu1  ;;  %v335_v36 = vadd.f32 %v1467_v45, %v1457_v27 }
  0xd5   :  { %v405_v44 = vpack.c.bf16 %v374_v40, %v373_v39  ;;  %v263_v48 = vadd.f32 %v1457_v27, %v262_v43  ;;  %v379_v60 = vmax.f32 %v271_v51, 0.0  ;;  %v413_v35 = vpack.c.bf16 %v390_v26, %v389_v24 }
  0xd6   :  { %v1160_v47 = vpop.f32.mrf.mxu0  ;;  %v1475_v54 = vpop.f32.mrf.mxu1  ;;  %v327_v37 = vadd.f32 %v1457_v27, %v326_v50  ;;  %v319_v39 = vadd.f32 %v1459_v28, %v1457_v27 }
  0xd7   :  { %v274_v49 = vadd.f32 %v1160_v47, %v1457_v27  ;;  %1193 = vmatprep.mubr.msk.bf16.mxu1 %vm460_vm1, %v405_v44  ;;  %v377_v57 = vmax.f32 %v263_v48, 0.0  ;;  %v392_v47 = vmax.f32 %v322_v41, 0.0 }
  0xd8   :  { %v265_v52 = vpop.f32.mrf.mxu0  ;;  %1194 = vmatmul.mubr.msk.bf16.vlgmr.msra.gmra.mxu1 %vm460_vm1, %v406_v46  ;;  %v329_v59 = vpop.f32.mrf.mxu1  ;;  %v393_v43 = vmax.f32 %v327_v37, 0.0  ;;  %v391_v46 = vmax.f32 %v319_v39, 0.0 }
  0xd9   :  { %v266_v53 = vadd.f32 %v1457_v27, %v265_v52  ;;  %v380_v55 = vmax.f32 %v274_v49, 0.0  ;;  %v330_v38 = vadd.f32 %v1457_v27, %v329_v59  ;;  %v338_v52 = vadd.f32 %v1475_v54, %v1457_v27 }
  0xda   :  { %v1163_v56 = vpop.f32.mrf.mxu0  ;;  %v1477_v1 = vpop.f32.mrf.mxu1  ;;  %v414_v51 = vpack.c.bf16 %v392_v47, %v391_v46 }
  0xdb   :  { %v378_v58 = vmax.f32 %v266_v53, 0.0  ;;  %v408_v63 = vpack.c.bf16 %v380_v55, %v379_v60  ;;  %v287_v4 = vadd.f32 %v1163_v56, %v1457_v27  ;;  %v394_v44 = vmax.f32 %v330_v38, 0.0 }
  0xdc   :  { %v278_v61 = vpop.f32.mrf.mxu0  ;;  %v342_v9 = vpop.f32.mrf.mxu1  ;;  %v351_v45 = vadd.f32 %v1477_v1, %v1457_v27 }
  0xdd   :  { %v407_v62 = vpack.c.bf16 %v378_v58, %v377_v57  ;;  %v279_v2 = vadd.f32 %v1457_v27, %v278_v61  ;;  %v383_v12 = vmax.f32 %v287_v4, 0.0  ;;  %v415_v49 = vpack.c.bf16 %v394_v44, %v393_v43 }
  0xde   :  { %v1164_v0 = vpop.f32.mrf.mxu0  ;;  %v1180_v19 = vpop.f32.mrf.mxu1  ;;  %v343_v50 = vadd.f32 %v1457_v27, %v342_v9  ;;  %v395_v57 = vmax.f32 %v335_v36, 0.0  ;;  %v396_v58 = vmax.f32 %v338_v52, 0.0 }
  0xdf   :  { %v290_v3 = vadd.f32 %v1164_v0, %v1457_v27  ;;  %1197 = vmatprep.mubr.msk.bf16.mxu1 %vm460_vm1, %v407_v62  ;;  %v381_v10 = vmax.f32 %v279_v2, 0.0  ;;  %v354_v54 = vadd.f32 %v1180_v19, %v1457_v27 }
  0xe0   :  { %v281_v5 = vpop.f32.mrf.mxu0  ;;  %1198 = vmatmul.mubr.msk.bf16.gmra.mxu1 %vm460_vm1, %v408_v63  ;;  %v345_v30 = vpop.f32.mrf.mxu1  ;;  %v397_v55 = vmax.f32 %v343_v50, 0.0  ;;  %v416_v63 = vpack.c.bf16 %v396_v58, %v395_v57 }
  0xe1   :  { %v282_v6 = vadd.f32 %v1457_v27, %v281_v5  ;;  %v384_v7 = vmax.f32 %v290_v3, 0.0  ;;  %v346_v28 = vadd.f32 %v1457_v27, %v345_v30  ;;  %v399_v3 = vmax.f32 %v351_v45, 0.0 }
  0xe2   :  { %v1167_v8 = vpop.f32.mrf.mxu0  ;;  %v1183_v42 = vpop.f32.mrf.mxu1  ;;  %v400_v4 = vmax.f32 %v354_v54, 0.0 }
  0xe3   :  { %v382_v11 = vmax.f32 %v282_v6, 0.0  ;;  %v410_v17 = vpack.c.bf16 %v384_v7, %v383_v12  ;;  %v303_v22 = vadd.f32 %v1167_v8, %v1457_v27  ;;  %v398_v56 = vmax.f32 %v346_v28, 0.0 }
  0xe4   :  { %v294_v13 = vpop.f32.mrf.mxu0  ;;  %v358_v48 = vpop.f32.mrf.mxu1  ;;  %v418_v6 = vpack.c.bf16 %v400_v4, %v399_v3  ;;  %v367_v7 = vadd.f32 %v1183_v42, %v1457_v27 }
  0xe5   :  { %v409_v14 = vpack.c.bf16 %v382_v11, %v381_v10  ;;  %v295_v20 = vadd.f32 %v1457_v27, %v294_v13  ;;  %v387_v33 = vmax.f32 %v303_v22, 0.0  ;;  %v417_v60 = vpack.c.bf16 %v398_v56, %v397_v55  ;;  %v1297_v11 = vld [vmem:[%s1623_s5] sm:$0xff]  }
  0xe6   :  { %v1168_v18 = vpop.f32.mrf.mxu0  ;;  %v1184_v53 = vpop.f32.mrf.mxu1  ;;  %v359_v61 = vadd.f32 %v1457_v27, %v358_v48  ;;  %v403_v1 = vmax.f32 %v367_v7, 0.0  ;;  %1231 = vmatprep.subr.bf16.mxu0 %v1297_v11 }
  0xe7   :  { %v306_v21 = vadd.f32 %v1168_v18, %v1457_v27  ;;  %1201 = vmatprep.mubr.msk.bf16.mxu1 %vm460_vm1, %v409_v14  ;;  %v385_v31 = vmax.f32 %v295_v20, 0.0  ;;  %v370_v8 = vadd.f32 %v1184_v53, %v1457_v27  ;;  %1232 = vmatpush3.bf16.msra.mxu0 %v1297_v11 }
  0xe8   :  { %v297_v23 = vpop.f32.mrf.mxu0  ;;  %1202 = vmatmul.mubr.msk.bf16.gmra.mxu1 %vm460_vm1, %v410_v17  ;;  %v361_v59 = vpop.f32.mrf.mxu1  ;;  %v401_v0 = vmax.f32 %v359_v61, 0.0 }
  0xe9   :  { %v298_v25 = vadd.f32 %v1457_v27, %v297_v23  ;;  %v388_v29 = vmax.f32 %v306_v21, 0.0  ;;  %v362_v62 = vadd.f32 %v1457_v27, %v361_v59  ;;  %v404_v9 = vmax.f32 %v370_v8, 0.0  ;;  %v1528_v27 = vld [vmem:[%s1622_s4] ss:$0 sm:$0xff] }
  0xeb   :  { %v386_v32 = vmax.f32 %v298_v25, 0.0  ;;  %v412_v40 = vpack.c.bf16 %v388_v29, %v387_v33  ;;  %v402_v2 = vmax.f32 %v362_v62, 0.0  ;;  %v420_v10 = vpack.c.bf16 %v404_v9, %v403_v1 }
  0xed   :  { %v411_v34 = vpack.c.bf16 %v386_v32, %v385_v31  ;;  %v419_v5 = vpack.c.bf16 %v402_v2, %v401_v0 }
  0xef   :  { %1205 = vmatprep.mubr.msk.bf16.mxu1 %vm460_vm1, %v411_v34 }
  0xf0   :  { %1206 = vmatmul.mubr.msk.bf16.gmra.mxu1 %vm460_vm1, %v412_v40 }
  0xf1   :  { %1209 = vmatprep.mubr.msk.bf16.mxu1 %vm460_vm1, %v413_v35 }
  0xf8   :  { %1210 = vmatmul.mubr.msk.bf16.gmra.mxu1 %vm460_vm1, %v414_v51 }
  0xf9   :  { %1213 = vmatprep.mubr.msk.bf16.mxu1 %vm460_vm1, %v415_v49 }
 0x100   :  { %1214 = vmatmul.mubr.msk.bf16.gmra.mxu1 %vm460_vm1, %v416_v63 }
 0x101   :  { %1217 = vmatprep.mubr.msk.bf16.mxu1 %vm460_vm1, %v417_v60 }
 0x108   :  { %1218 = vmatmul.mubr.msk.bf16.gmra.mxu1 %vm460_vm1, %v418_v6 }
 0x109   :  { %1221 = vmatprep.mubr.msk.bf16.mxu1 %vm460_vm1, %v419_v5 }
 0x110   :  { %1222 = vmatmul.mubr.msk.bf16.gmra.mxu1 %vm460_vm1, %v420_v10 }
 0x198   :  { %v1195_v12 = vpop.f32.mrf.mxu1 }
 0x199   :  { %v552_v17 = vadd.f32 %v1195_v12, %v1528_v27 }
 0x19a   :  { %v543_v13 = vpop.f32.mrf.mxu1 }
 0x19b   :  { %v544_v15 = vadd.f32 %v1528_v27, %v543_v13  ;;  %v672_v24 = vmax.f32 %v552_v17, 0.0 }
 0x19c   :  { %v1196_v14 = vpop.f32.mrf.mxu1 }
 0x19d   :  { %v555_v16 = vadd.f32 %v1196_v14, %v1528_v27  ;;  %v670_v22 = vmax.f32 %v544_v15, 0.0 }
 0x19e   :  { %v546_v18 = vpop.f32.mrf.mxu1 }
 0x19f   :  { %v547_v19 = vadd.f32 %v1528_v27, %v546_v18  ;;  %v673_v20 = vmax.f32 %v555_v16, 0.0 }
 0x1a0   :  { %v1199_v21 = vpop.f32.mrf.mxu1 }
 0x1a1   :  { %v671_v23 = vmax.f32 %v547_v19, 0.0  ;;  %v703_v29 = vpack.c.bf16 %v673_v20, %v672_v24  ;;  %v568_v33 = vadd.f32 %v1199_v21, %v1528_v27 }
 0x1a2   :  { %v559_v25 = vpop.f32.mrf.mxu1 }
 0x1a3   :  { %v702_v26 = vpack.c.bf16 %v671_v23, %v670_v22  ;;  %v560_v31 = vadd.f32 %v1528_v27, %v559_v25  ;;  %v676_v41 = vmax.f32 %v568_v33, 0.0 }
 0x1a4   :  { %v1200_v30 = vpop.f32.mrf.mxu1 }
 0x1a5   :  { %v571_v32 = vadd.f32 %v1200_v30, %v1528_v27  ;;  %1233 = vmatprep.mubr.msk.bf16.mxu0 %vm460_vm1, %v702_v26  ;;  %v674_v39 = vmax.f32 %v560_v31, 0.0 }
 0x1a6   :  { %v562_v34 = vpop.f32.mrf.mxu1  ;;  %1234 = vmatmul.mubr.msk.bf16.vlgmr.msra.gmra.mxu0 %vm460_vm1, %v703_v29 }
 0x1a7   :  { %v563_v35 = vadd.f32 %v1528_v27, %v562_v34  ;;  %v677_v37 = vmax.f32 %v571_v32, 0.0 }
 0x1a8   :  { %v1203_v38 = vpop.f32.mrf.mxu1 }
 0x1a9   :  { %v675_v40 = vmax.f32 %v563_v35, 0.0  ;;  %v705_v44 = vpack.c.bf16 %v677_v37, %v676_v41  ;;  %v584_v49 = vadd.f32 %v1203_v38, %v1528_v27 }
 0x1aa   :  { %v575_v42 = vpop.f32.mrf.mxu1 }
 0x1ab   :  { %v704_v43 = vpack.c.bf16 %v675_v40, %v674_v39  ;;  %v576_v47 = vadd.f32 %v1528_v27, %v575_v42  ;;  %v680_v55 = vmax.f32 %v584_v49, 0.0 }
 0x1ac   :  { %v1204_v46 = vpop.f32.mrf.mxu1 }
 0x1ad   :  { %v587_v48 = vadd.f32 %v1204_v46, %v1528_v27  ;;  %1237 = vmatprep.mubr.msk.bf16.mxu0 %vm460_vm1, %v704_v43  ;;  %v678_v52 = vmax.f32 %v576_v47, 0.0 }
 0x1ae   :  { %v578_v50 = vpop.f32.mrf.mxu1  ;;  %1238 = vmatmul.mubr.msk.bf16.gmra.mxu0 %vm460_vm1, %v705_v44 }
 0x1af   :  { %v579_v28 = vadd.f32 %v1528_v27, %v578_v50  ;;  %v681_v51 = vmax.f32 %v587_v48, 0.0 }
 0x1b0   :  { %v1207_v36 = vpop.f32.mrf.mxu1 }
 0x1b1   :  { %v679_v53 = vmax.f32 %v579_v28, 0.0  ;;  %v707_v58 = vpack.c.bf16 %v681_v51, %v680_v55  ;;  %v600_v62 = vadd.f32 %v1207_v36, %v1528_v27 }
 0x1b2   :  { %v591_v56 = vpop.f32.mrf.mxu1 }
 0x1b3   :  { %v706_v57 = vpack.c.bf16 %v679_v53, %v678_v52  ;;  %v592_v60 = vadd.f32 %v1528_v27, %v591_v56  ;;  %v684_v4 = vmax.f32 %v600_v62, 0.0 }
 0x1b4   :  { %v1208_v59 = vpop.f32.mrf.mxu1 }
 0x1b5   :  { %v603_v61 = vadd.f32 %v1208_v59, %v1528_v27  ;;  %1241 = vmatprep.mubr.msk.bf16.mxu0 %vm460_vm1, %v706_v57  ;;  %v682_v2 = vmax.f32 %v592_v60, 0.0 }
 0x1b6   :  { %v594_v63 = vpop.f32.mrf.mxu1  ;;  %1242 = vmatmul.mubr.msk.bf16.gmra.mxu0 %vm460_vm1, %v707_v58 }
 0x1b7   :  { %v595_v45 = vadd.f32 %v1528_v27, %v594_v63  ;;  %v685_v54 = vmax.f32 %v603_v61, 0.0 }
 0x1b8   :  { %v1211_v0 = vpop.f32.mrf.mxu1 }
 0x1b9   :  { %v683_v3 = vmax.f32 %v595_v45, 0.0  ;;  %v709_v7 = vpack.c.bf16 %v685_v54, %v684_v4  ;;  %v616_v10 = vadd.f32 %v1211_v0, %v1528_v27  ;;  %v1581_v45 = vld [vmem:[%s1624_s6] ss:$0 sm:$0xff]  ;;  %s1320_s6 = smov [#allocation2]  }
 0x1ba   :  { %v607_v5 = vpop.f32.mrf.mxu1  ;;  %s1003_s29 = sshll.u32 %s1320_s6, 4  ;;  %s1004_s29 = int_to_ptr.vmem [resolvable:$true] %s1003_s29 }
 0x1bb   :  { %v708_v6 = vpack.c.bf16 %v683_v3, %v682_v2  ;;  %v608_v1 = vadd.f32 %v1528_v27, %v607_v5  ;;  %v688_v17 = vmax.f32 %v616_v10, 0.0  ;;  %s1298_s30 = scalar_lea.vmem %s1004_s29, 4096  ;;  %p1303_p1 = scmp.lt.s32.totalorder %s1004_s29, %s1004_s29 }
 0x1bc   :  { %v1212_v8 = vpop.f32.mrf.mxu1  ;;  %p1299_p0 = scmp.ne.s32.totalorder %s1004_s29, %s1298_s30  ;;  %p1304_p2 = scmp.lt.s32.totalorder %s1298_s30, %s1298_s30 }
 0x1bd   :  { %v619_v9 = vadd.f32 %v1212_v8, %v1528_v27  ;;  %1245 = vmatprep.mubr.msk.bf16.mxu0 %vm460_vm1, %v708_v6  ;;  %v686_v15 = vmax.f32 %v608_v1, 0.0 }
 0x1be   :  { %v610_v11 = vpop.f32.mrf.mxu1  ;;  %1246 = vmatmul.mubr.msk.bf16.gmra.mxu0 %vm460_vm1, %v709_v7  ;;  %p1305_p3 = por %p1304_p2, %p1303_p1 }
 0x1bf   :  { %v611_v12 = vadd.f32 %v1528_v27, %v610_v11  ;;  %v689_v13 = vmax.f32 %v619_v9, 0.0 }
 0x1c0   :  { %v1215_v14 = vpop.f32.mrf.mxu1  ;;  %p1306_p4 = pnand %p1305_p3, %p1299_p0 }
 0x1c1   :  { %v687_v16 = vmax.f32 %v611_v12, 0.0  ;;  %v711_v20 = vpack.c.bf16 %v689_v13, %v688_v17  ;;  %v632_v24 = vadd.f32 %v1215_v14, %v1528_v27 }
 0x1c2   :  { %v623_v18 = vpop.f32.mrf.mxu1 }
 0x1c3   :  { %v710_v19 = vpack.c.bf16 %v687_v16, %v686_v15  ;;  %v624_v22 = vadd.f32 %v1528_v27, %v623_v18  ;;  %v692_v33 = vmax.f32 %v632_v24, 0.0 }
 0x1c4   :  { %v1216_v21 = vpop.f32.mrf.mxu1 }
 0x1c5   :  { %v635_v23 = vadd.f32 %v1216_v21, %v1528_v27  ;;  %1249 = vmatprep.mubr.msk.bf16.mxu0 %vm460_vm1, %v710_v19  ;;  %v690_v31 = vmax.f32 %v624_v22, 0.0 }
 0x1c6   :  { %v626_v25 = vpop.f32.mrf.mxu1  ;;  %1250 = vmatmul.mubr.msk.bf16.gmra.mxu0 %vm460_vm1, %v711_v20 }
 0x1c7   :  { %v627_v26 = vadd.f32 %v1528_v27, %v626_v25  ;;  %v693_v29 = vmax.f32 %v635_v23, 0.0 }
 0x1c8   :  { %v1219_v30 = vpop.f32.mrf.mxu1 }
 0x1c9   :  { %v691_v32 = vmax.f32 %v627_v26, 0.0  ;;  %v713_v37 = vpack.c.bf16 %v693_v29, %v692_v33  ;;  %v648_v41 = vadd.f32 %v1219_v30, %v1528_v27 }
 0x1ca   :  { %v639_v34 = vpop.f32.mrf.mxu1 }
 0x1cb   :  { %v712_v35 = vpack.c.bf16 %v691_v32, %v690_v31  ;;  %v640_v39 = vadd.f32 %v1528_v27, %v639_v34  ;;  %v696_v49 = vmax.f32 %v648_v41, 0.0 }
 0x1cc   :  { %v1220_v38 = vpop.f32.mrf.mxu1 }
 0x1cd   :  { %v651_v40 = vadd.f32 %v1220_v38, %v1528_v27  ;;  %1253 = vmatprep.mubr.msk.bf16.mxu0 %vm460_vm1, %v712_v35  ;;  %v694_v47 = vmax.f32 %v640_v39, 0.0 }
 0x1ce   :  { %v642_v42 = vpop.f32.mrf.mxu1  ;;  %1254 = vmatmul.mubr.msk.bf16.gmra.mxu0 %vm460_vm1, %v713_v37 }
 0x1cf   :  { %v643_v43 = vadd.f32 %v1528_v27, %v642_v42  ;;  %v697_v44 = vmax.f32 %v651_v40, 0.0 }
 0x1d0   :  { %v1223_v46 = vpop.f32.mrf.mxu1 }
 0x1d1   :  { %v695_v48 = vmax.f32 %v643_v43, 0.0  ;;  %v715_v51 = vpack.c.bf16 %v697_v44, %v696_v49  ;;  %v664_v55 = vadd.f32 %v1223_v46, %v1528_v27 }
 0x1d2   :  { %v655_v50 = vpop.f32.mrf.mxu1 }
 0x1d3   :  { %v714_v28 = vpack.c.bf16 %v695_v48, %v694_v47  ;;  %v656_v52 = vadd.f32 %v1528_v27, %v655_v50  ;;  %v700_v61 = vmax.f32 %v664_v55, 0.0 }
 0x1d4   :  { %v1224_v36 = vpop.f32.mrf.mxu1 }
 0x1d5   :  { %v667_v53 = vadd.f32 %v1224_v36, %v1528_v27  ;;  %1257 = vmatprep.mubr.msk.bf16.mxu0 %vm460_vm1, %v714_v28  ;;  %v698_v59 = vmax.f32 %v656_v52, 0.0 }
 0x1d6   :  { %v658_v56 = vpop.f32.mrf.mxu1  ;;  %1258 = vmatmul.mubr.msk.bf16.gmra.mxu0 %vm460_vm1, %v715_v51 }
 0x1d7   :  { %v659_v57 = vadd.f32 %v1528_v27, %v658_v56  ;;  %v701_v58 = vmax.f32 %v667_v53, 0.0 }
 0x1d9   :  { %v699_v60 = vmax.f32 %v659_v57, 0.0  ;;  %v717_v63 = vpack.c.bf16 %v701_v58, %v700_v61 }
 0x1db   :  { %v716_v62 = vpack.c.bf16 %v699_v60, %v698_v59 }
 0x1dd   :  { %1261 = vmatprep.mubr.msk.bf16.mxu0 %vm460_vm1, %v716_v62 }
 0x1de   :  { %1262 = vmatmul.mubr.msk.bf16.gmra.mxu0 %vm460_vm1, %v717_v63 }
 0x266   :  { %v1235_v54 = vpop.f32.mrf.mxu0 }
 0x267   :  { %v848_v0 = vadd.f32 %v1235_v54, %v1581_v45 }
 0x268   :  { %v839_v2 = vpop.f32.mrf.mxu0 }
 0x269   :  { %968 = vst [vmem:[#allocation2 + $0x10] sm:$0xff] %v848_v0  ;;  %v840_v27 = vadd.f32 %v1581_v45, %v839_v2 }
 0x26a   :  { %v1236_v3 = vpop.f32.mrf.mxu0 }
 0x26b   :  { %966 = vst [vmem:[#allocation2] sm:$0xff] %v840_v27  ;;  %v851_v4 = vadd.f32 %v1236_v3, %v1581_v45 }
 0x26c   :  { %v842_v5 = vpop.f32.mrf.mxu0 }
 0x26d   :  { %969 = vst [vmem:[#allocation2 + $0x18] sm:$0xff] %v851_v4  ;;  %v843_v6 = vadd.f32 %v1581_v45, %v842_v5 }
 0x26e   :  { %v1239_v7 = vpop.f32.mrf.mxu0 }
 0x26f   :  { %967 = vst [vmem:[#allocation2 + $0x8] sm:$0xff] %v843_v6  ;;  %v864_v8 = vadd.f32 %v1239_v7, %v1581_v45 }
 0x270   :  { %v855_v1 = vpop.f32.mrf.mxu0 }
 0x271   :  { %972 = vst [vmem:[#allocation2 + $0x30] sm:$0xff] %v864_v8  ;;  %v856_v9 = vadd.f32 %v1581_v45, %v855_v1 }
 0x272   :  { %v1240_v10 = vpop.f32.mrf.mxu0 }
 0x273   :  { %970 = vst [vmem:[#allocation2 + $0x20] sm:$0xff] %v856_v9  ;;  %v867_v11 = vadd.f32 %v1240_v10, %v1581_v45 }
 0x274   :  { %v858_v12 = vpop.f32.mrf.mxu0 }
 0x275   :  { %973 = vst [vmem:[#allocation2 + $0x38] sm:$0xff] %v867_v11  ;;  %v859_v13 = vadd.f32 %v1581_v45, %v858_v12 }
 0x276   :  { %v1243_v14 = vpop.f32.mrf.mxu0 }
 0x277   :  { %971 = vst [vmem:[#allocation2 + $0x28] sm:$0xff] %v859_v13  ;;  %v880_v15 = vadd.f32 %v1243_v14, %v1581_v45 }
 0x278   :  { %v871_v16 = vpop.f32.mrf.mxu0 }
 0x279   :  { %976 = vst [vmem:[#allocation2 + $0x50] sm:$0xff] %v880_v15  ;;  %v872_v17 = vadd.f32 %v1581_v45, %v871_v16 }
 0x27a   :  { %v1244_v18 = vpop.f32.mrf.mxu0 }
 0x27b   :  { %974 = vst [vmem:[#allocation2 + $0x40] sm:$0xff] %v872_v17  ;;  %v883_v19 = vadd.f32 %v1244_v18, %v1581_v45 }
 0x27c   :  { %v874_v20 = vpop.f32.mrf.mxu0 }
 0x27d   :  { %977 = vst [vmem:[#allocation2 + $0x58] sm:$0xff] %v883_v19  ;;  %v875_v21 = vadd.f32 %v1581_v45, %v874_v20 }
 0x27e   :  { %v1247_v22 = vpop.f32.mrf.mxu0 }
 0x27f   :  { %975 = vst [vmem:[#allocation2 + $0x48] sm:$0xff] %v875_v21  ;;  %v896_v23 = vadd.f32 %v1247_v22, %v1581_v45 }
 0x280   :  { %v887_v24 = vpop.f32.mrf.mxu0 }
 0x281   :  { %980 = vst [vmem:[#allocation2 + $0x70] sm:$0xff] %v896_v23  ;;  %v888_v25 = vadd.f32 %v1581_v45, %v887_v24 }
 0x282   :  { %v1248_v26 = vpop.f32.mrf.mxu0 }
 0x283   :  { %978 = vst [vmem:[#allocation2 + $0x60] sm:$0xff] %v888_v25  ;;  %v899_v29 = vadd.f32 %v1248_v26, %v1581_v45 }
 0x284   :  { %v890_v30 = vpop.f32.mrf.mxu0 }
 0x285   :  { %981 = vst [vmem:[#allocation2 + $0x78] sm:$0xff] %v899_v29  ;;  %v891_v31 = vadd.f32 %v1581_v45, %v890_v30 }
 0x286   :  { %v1251_v32 = vpop.f32.mrf.mxu0 }
 0x287   :  { %979 = vst [vmem:[#allocation2 + $0x68] sm:$0xff] %v891_v31  ;;  %v912_v33 = vadd.f32 %v1251_v32, %v1581_v45 }
 0x288   :  { %v903_v34 = vpop.f32.mrf.mxu0 }
 0x289   :  { %984 = vst [vmem:[#allocation2 + $0x90] sm:$0xff] %v912_v33  ;;  %v904_v35 = vadd.f32 %v1581_v45, %v903_v34 }
 0x28a   :  { %v1252_v37 = vpop.f32.mrf.mxu0 }
 0x28b   :  { %982 = vst [vmem:[#allocation2 + $0x80] sm:$0xff] %v904_v35  ;;  %v915_v38 = vadd.f32 %v1252_v37, %v1581_v45 }
 0x28c   :  { %v906_v39 = vpop.f32.mrf.mxu0 }
 0x28d   :  { %985 = vst [vmem:[#allocation2 + $0x98] sm:$0xff] %v915_v38  ;;  %v907_v40 = vadd.f32 %v1581_v45, %v906_v39 }
 0x28e   :  { %v1255_v41 = vpop.f32.mrf.mxu0 }
 0x28f   :  { %983 = vst [vmem:[#allocation2 + $0x88] sm:$0xff] %v907_v40  ;;  %v928_v42 = vadd.f32 %v1255_v41, %v1581_v45 }
 0x290   :  { %v919_v43 = vpop.f32.mrf.mxu0 }
 0x291   :  { %988 = vst [vmem:[#allocation2 + $0xb0] sm:$0xff] %v928_v42  ;;  %v920_v44 = vadd.f32 %v1581_v45, %v919_v43 }
 0x292   :  { %v1256_v46 = vpop.f32.mrf.mxu0 }
 0x293   :  { %986 = vst [vmem:[#allocation2 + $0xa0] sm:$0xff] %v920_v44  ;;  %v931_v47 = vadd.f32 %v1256_v46, %v1581_v45 }
 0x294   :  { %v922_v48 = vpop.f32.mrf.mxu0 }
 0x295   :  { %989 = vst [vmem:[#allocation2 + $0xb8] sm:$0xff] %v931_v47  ;;  %v923_v49 = vadd.f32 %v1581_v45, %v922_v48 }
 0x296   :  { %v1259_v50 = vpop.f32.mrf.mxu0 }
 0x297   :  { %987 = vst [vmem:[#allocation2 + $0xa8] sm:$0xff] %v923_v49  ;;  %v944_v28 = vadd.f32 %v1259_v50, %v1581_v45 }
 0x298   :  { %v935_v51 = vpop.f32.mrf.mxu0 }
 0x299   :  { %992 = vst [vmem:[#allocation2 + $0xd0] sm:$0xff] %v944_v28  ;;  %v936_v36 = vadd.f32 %v1581_v45, %v935_v51 }
 0x29a   :  { %v1260_v52 = vpop.f32.mrf.mxu0 }
 0x29b   :  { %990 = vst [vmem:[#allocation2 + $0xc0] sm:$0xff] %v936_v36  ;;  %v947_v53 = vadd.f32 %v1260_v52, %v1581_v45 }
 0x29c   :  { %v938_v55 = vpop.f32.mrf.mxu0 }
 0x29d   :  { %993 = vst [vmem:[#allocation2 + $0xd8] sm:$0xff] %v947_v53  ;;  %v939_v56 = vadd.f32 %v1581_v45, %v938_v55 }
 0x29e   :  { %v1263_v57 = vpop.f32.mrf.mxu0 }
 0x29f   :  { %991 = vst [vmem:[#allocation2 + $0xc8] sm:$0xff] %v939_v56  ;;  %v960_v58 = vadd.f32 %v1263_v57, %v1581_v45 }
 0x2a0   :  { %v951_v59 = vpop.f32.mrf.mxu0 }
 0x2a1   :  { %996 = vst [vmem:[#allocation2 + $0xf0] sm:$0xff] %v960_v58  ;;  %v952_v60 = vadd.f32 %v1581_v45, %v951_v59 }
 0x2a2   :  { %v1264_v61 = vpop.f32.mrf.mxu0 }
 0x2a3   :  { %994 = vst [vmem:[#allocation2 + $0xe0] sm:$0xff] %v952_v60  ;;  %v963_v62 = vadd.f32 %v1264_v61, %v1581_v45 }
 0x2a4   :  { %v954_v63 = vpop.f32.mrf.mxu0 }
 0x2a5   :  { %997 = vst [vmem:[#allocation2 + $0xf8] sm:$0xff] %v963_v62  ;;  %v955_v54 = vadd.f32 %v1581_v45, %v954_v63 }
 0x2a7   :  { %995 = vst [vmem:[#allocation2 + $0xe8] sm:$0xff] %v955_v54 }
 0x2a8   :  { %1309 = shalt.err (!%p1306_p4)
}
 0x2a9   :  { %s1321_s8 = smov 128   ;;  %s1322_s9 = smov 8  }
 0x2aa   :  { %1009 = dma.vmem_to_hbm [thread:$0]  %s1004_s29, 4096, %s1625_s7, [#allocation3], %s1321_s8, %s1321_s8, %s1322_s9  }
 0x2ab   :  { %1318 = dma.done.wait [#allocation3], 4096  }
 0x2ac   :  { %1319 = vsyncadd [#allocation3], 4294963200 }
 0x2ad   :  { %1013 = vsyncpa [#allocation3], 1 }

// kernel: tpu_custom_call.1
= control target key start
LH: loop header
LB: loop body
LE: loop exit
PB: predicated region body
PF: predicated region fallthrough
CT: control target
= control target key end

     0   :  { %vm163_vm0 = vcmask 261120   ;;  %s1618_s0 = inlined_call_operand.vmem [shape: bf16[256,32], index: 0, kind: input, shape index: {}]   ;;  %s1619_s1 = inlined_call_operand.vmem [shape: bf16[32,64], index: 1, kind: input, shape index: {}]   ;;  %s1620_s2 = inlined_call_operand.vmem [shape: f32[1,64], index: 2, kind: input, shape index: {}]   ;;  %s1621_s3 = inlined_call_operand.vmem [shape: bf16[64,64], index: 3, kind: input, shape index: {}]   ;;  %s1622_s4 = inlined_call_operand.vmem [shape: f32[1,64], index: 4, kind: input, shape index: {}]   ;;  %s1623_s5 = inlined_call_operand.vmem [shape: bf16[64,128], index: 5, kind: input, shape index: {}]   ;;  %s1624_s6 = inlined_call_operand.vmem [shape: f32[1,128], index: 6, kind: input, shape index: {}]   ;;  %s1625_s7 = inlined_call_operand.hbm [shape: f32[256,128], index: 7, kind: output, shape index: {}]  }
   0x1   :  { %v1272_v0 = vld [vmem:[%s1619_s1 + $0x8] sm:$0xff]   ;;  %v1273_v1 = vld [vmem:[%s1619_s1] sm:$0xff]   ;;  %v1276_v4 = vld [vmem:[%s1618_s0 + $0x10] sm:$0xff]  }
   0x2   :  { %1149 = vmatprep.subr.bf16.mxu0 %v1272_v0  ;;  %v1274_v2 = vld [vmem:[%s1618_s0] sm:$0xff]   ;;  %1265 = vmatprep.subr.bf16.mxu1 %v1272_v0  ;;  %v1275_v3 = vld [vmem:[%s1618_s0 + $0x8] sm:$0xff]   ;;  %v1284_v7 = vld [vmem:[%s1618_s0 + $0x50] sm:$0xff]  }
   0x3   :  { %1150 = vmatpush3.bf16.msra.mxu0 %v1272_v0  ;;  %1267 = vmatpush3.bf16.msra.mxu1 %v1272_v0  ;;  %v1282_v5 = vld [vmem:[%s1618_s0 + $0x40] sm:$0xff]   ;;  %v1283_v6 = vld [vmem:[%s1618_s0 + $0x48] sm:$0xff]   ;;  %v1277_v8 = vld [vmem:[%s1618_s0 + $0x18] sm:$0xff]  }
   0x4   :  { %1151 = vmatprep.subr.bf16.mxu0 %v1273_v1  ;;  %1153 = vmatprep.mubr.msk.bf16.mxu0 %vm163_vm0, %v1274_v2  ;;  %v1278_v9 = vld [vmem:[%s1618_s0 + $0x20] sm:$0xff]   ;;  %v1285_v10 = vld [vmem:[%s1618_s0 + $0x58] sm:$0xff]   ;;  %v1291_v13 = vld [vmem:[%s1621_s3 + $0x10] sm:$0xff]  }
   0x5   :  { %1266 = vmatprep.subr.bf16.mxu1 %v1273_v1  ;;  %1169 = vmatprep.mubr.msk.bf16.mxu1 %vm163_vm0, %v1282_v5  ;;  %v1286_v11 = vld [vmem:[%s1618_s0 + $0x60] sm:$0xff]   ;;  %v1290_v12 = vld [vmem:[%s1621_s3 + $0x18] sm:$0xff]   ;;  %v1279_v14 = vld [vmem:[%s1618_s0 + $0x28] sm:$0xff]  }
   0x6   :  { %v1280_v15 = vld [vmem:[%s1618_s0 + $0x30] sm:$0xff]   ;;  %v1292_v16 = vld [vmem:[%s1621_s3 + $0x8] sm:$0xff]  }
   0x7   :  { %1152 = vmatpush3.bf16.msra.mxu0 %v1273_v1  ;;  %1268 = vmatpush3.bf16.msra.mxu1 %v1273_v1 }
   0x8   :  { %1185 = vmatprep.subr.bf16.mxu1 %v1290_v12 }
   0xa   :  { %1154 = vmatmul.mubr.msk.bf16.vlgmr.msra.gmra.mxu0 %vm163_vm0, %v1275_v3  ;;  %1170 = vmatmul.mubr.msk.bf16.vlgmr.msra.gmra.mxu1 %vm163_vm0, %v1283_v6 }
   0xb   :  { %1157 = vmatprep.mubr.msk.bf16.mxu0 %vm163_vm0, %v1276_v4  ;;  %1173 = vmatprep.mubr.msk.bf16.mxu1 %vm163_vm0, %v1284_v7 }
   0xc   :  { %1186 = vmatpush3.bf16.msra.mxu1 %v1290_v12 }
   0xd   :  { %1187 = vmatprep.subr.bf16.mxu1 %v1291_v13 }
  0x12   :  { %1158 = vmatmul.mubr.msk.bf16.gmra.mxu0 %vm163_vm0, %v1277_v8  ;;  %1174 = vmatmul.mubr.msk.bf16.gmra.mxu1 %vm163_vm0, %v1285_v10 }
  0x13   :  { %1161 = vmatprep.mubr.msk.bf16.mxu0 %vm163_vm0, %v1278_v9  ;;  %1177 = vmatprep.mubr.msk.bf16.mxu1 %vm163_vm0, %v1286_v11 }
  0x14   :  { %12 = vsyncpa [#allocation3], 0  ;;  %v1287_v17 = vld [vmem:[%s1618_s0 + $0x68] sm:$0xff]   ;;  %v1288_v18 = vld [vmem:[%s1618_s0 + $0x70] sm:$0xff]   ;;  %1188 = vmatpush3.bf16.msra.mxu1 %v1291_v13  ;;  %vm460_vm1 = vcmask 523264  }
  0x15   :  { %1189 = vmatprep.subr.bf16.mxu1 %v1292_v16  ;;  %v1281_v19 = vld [vmem:[%s1618_s0 + $0x38] sm:$0xff]   ;;  %v1293_v21 = vld [vmem:[%s1621_s3] sm:$0xff]   ;;  %v1295_v23 = vld [vmem:[%s1623_s5 + $0x10] sm:$0xff]  }
  0x16   :  { %v1289_v20 = vld [vmem:[%s1618_s0 + $0x78] sm:$0xff]   ;;  %v1296_v24 = vld [vmem:[%s1623_s5 + $0x8] sm:$0xff]   ;;  %v1457_v27 = vld [vmem:[%s1620_s2] ss:$0 sm:$0xff] }
  0x17   :  { %v1294_v22 = vld [vmem:[%s1623_s5 + $0x18] sm:$0xff]  }
  0x18   :  { %1190 = vmatpush3.bf16.msra.mxu1 %v1292_v16  ;;  %1225 = vmatprep.subr.bf16.mxu0 %v1294_v22 }
  0x19   :  { %1191 = vmatprep.subr.bf16.mxu1 %v1293_v21  ;;  %1226 = vmatpush3.bf16.msra.mxu0 %v1294_v22 }
  0x1a   :  { %1162 = vmatmul.mubr.msk.bf16.gmra.mxu0 %vm163_vm0, %v1279_v14  ;;  %1178 = vmatmul.mubr.msk.bf16.gmra.mxu1 %vm163_vm0, %v1287_v17 }
  0x1b   :  { %1165 = vmatprep.mubr.msk.bf16.mxu0 %vm163_vm0, %v1280_v15  ;;  %1181 = vmatprep.mubr.msk.bf16.mxu1 %vm163_vm0, %v1288_v18 }
  0x1c   :  { %1192 = vmatpush3.bf16.msra.mxu1 %v1293_v21  ;;  %1227 = vmatprep.subr.bf16.mxu0 %v1295_v23 }
  0x1d   :  { %1228 = vmatpush3.bf16.msra.mxu0 %v1295_v23 }
  0x1e   :  { %1229 = vmatprep.subr.bf16.mxu0 %v1296_v24 }
  0x21   :  { %1230 = vmatpush3.bf16.msra.mxu0 %v1296_v24 }
  0x22   :  { %1166 = vmatmul.mubr.msk.bf16.gmra.mxu0 %vm163_vm0, %v1281_v19  ;;  %1182 = vmatmul.mubr.msk.bf16.gmra.mxu1 %vm163_vm0, %v1289_v20 }
  0xca   :  { %v1155_v25 = vpop.f32.mrf.mxu0  ;;  %v1459_v28 = vpop.f32.mrf.mxu1 }
  0xcb   :  { %v255_v33 = vadd.f32 %v1155_v25, %v1457_v27 }
  0xcc   :  { %v246_v26 = vpop.f32.mrf.mxu0  ;;  %v310_v32 = vpop.f32.mrf.mxu1 }
  0xcd   :  { %v247_v30 = vadd.f32 %v1457_v27, %v246_v26  ;;  %v375_v42 = vmax.f32 %v255_v33, 0.0  ;;  %v311_v15 = vadd.f32 %v1457_v27, %v310_v32 }
  0xce   :  { %v1156_v29 = vpop.f32.mrf.mxu0  ;;  %v1465_v36 = vpop.f32.mrf.mxu1 }
  0xcf   :  { %v258_v31 = vadd.f32 %v1156_v29, %v1457_v27  ;;  %v373_v39 = vmax.f32 %v247_v30, 0.0  ;;  %v389_v24 = vmax.f32 %v311_v15, 0.0 }
  0xd0   :  { %v249_v34 = vpop.f32.mrf.mxu0  ;;  %v313_v41 = vpop.f32.mrf.mxu1 }
  0xd1   :  { %v250_v35 = vadd.f32 %v1457_v27, %v249_v34  ;;  %v376_v37 = vmax.f32 %v258_v31, 0.0  ;;  %v314_v16 = vadd.f32 %v1457_v27, %v313_v41  ;;  %v322_v41 = vadd.f32 %v1465_v36, %v1457_v27 }
  0xd2   :  { %v1159_v38 = vpop.f32.mrf.mxu0  ;;  %v1467_v45 = vpop.f32.mrf.mxu1 }
  0xd3   :  { %v374_v40 = vmax.f32 %v250_v35, 0.0  ;;  %v406_v46 = vpack.c.bf16 %v376_v37, %v375_v42  ;;  %v271_v51 = vadd.f32 %v1159_v38, %v1457_v27  ;;  %v390_v26 = vmax.f32 %v314_v16, 0.0 }
  0xd4   :  { %v262_v43 = vpop.f32.mrf.mxu0  ;;  %v326_v50 = vpop.f32.mrf.mxu1  ;;  %v335_v36 = vadd.f32 %v1467_v45, %v1457_v27 }
  0xd5   :  { %v405_v44 = vpack.c.bf16 %v374_v40, %v373_v39  ;;  %v263_v48 = vadd.f32 %v1457_v27, %v262_v43  ;;  %v379_v60 = vmax.f32 %v271_v51, 0.0  ;;  %v413_v35 = vpack.c.bf16 %v390_v26, %v389_v24 }
  0xd6   :  { %v1160_v47 = vpop.f32.mrf.mxu0  ;;  %v1475_v54 = vpop.f32.mrf.mxu1  ;;  %v327_v37 = vadd.f32 %v1457_v27, %v326_v50  ;;  %v319_v39 = vadd.f32 %v1459_v28, %v1457_v27 }
  0xd7   :  { %v274_v49 = vadd.f32 %v1160_v47, %v1457_v27  ;;  %1193 = vmatprep.mubr.msk.bf16.mxu1 %vm460_vm1, %v405_v44  ;;  %v377_v57 = vmax.f32 %v263_v48, 0.0  ;;  %v392_v47 = vmax.f32 %v322_v41, 0.0 }
  0xd8   :  { %v265_v52 = vpop.f32.mrf.mxu0  ;;  %1194 = vmatmul.mubr.msk.bf16.vlgmr.msra.gmra.mxu1 %vm460_vm1, %v406_v46  ;;  %v329_v59 = vpop.f32.mrf.mxu1  ;;  %v393_v43 = vmax.f32 %v327_v37, 0.0  ;;  %v391_v46 = vmax.f32 %v319_v39, 0.0 }
  0xd9   :  { %v266_v53 = vadd.f32 %v1457_v27, %v265_v52  ;;  %v380_v55 = vmax.f32 %v274_v49, 0.0  ;;  %v330_v38 = vadd.f32 %v1457_v27, %v329_v59  ;;  %v338_v52 = vadd.f32 %v1475_v54, %v1457_v27 }
  0xda   :  { %v1163_v56 = vpop.f32.mrf.mxu0  ;;  %v1477_v1 = vpop.f32.mrf.mxu1  ;;  %v414_v51 = vpack.c.bf16 %v392_v47, %v391_v46 }
  0xdb   :  { %v378_v58 = vmax.f32 %v266_v53, 0.0  ;;  %v408_v63 = vpack.c.bf16 %v380_v55, %v379_v60  ;;  %v287_v4 = vadd.f32 %v1163_v56, %v1457_v27  ;;  %v394_v44 = vmax.f32 %v330_v38, 0.0 }
  0xdc   :  { %v278_v61 = vpop.f32.mrf.mxu0  ;;  %v342_v9 = vpop.f32.mrf.mxu1  ;;  %v351_v45 = vadd.f32 %v1477_v1, %v1457_v27 }
  0xdd   :  { %v407_v62 = vpack.c.bf16 %v378_v58, %v377_v57  ;;  %v279_v2 = vadd.f32 %v1457_v27, %v278_v61  ;;  %v383_v12 = vmax.f32 %v287_v4, 0.0  ;;  %v415_v49 = vpack.c.bf16 %v394_v44, %v393_v43 }
  0xde   :  { %v1164_v0 = vpop.f32.mrf.mxu0  ;;  %v1180_v19 = vpop.f32.mrf.mxu1  ;;  %v343_v50 = vadd.f32 %v1457_v27, %v342_v9  ;;  %v395_v57 = vmax.f32 %v335_v36, 0.0  ;;  %v396_v58 = vmax.f32 %v338_v52, 0.0 }
  0xdf   :  { %v290_v3 = vadd.f32 %v1164_v0, %v1457_v27  ;;  %1197 = vmatprep.mubr.msk.bf16.mxu1 %vm460_vm1, %v407_v62  ;;  %v381_v10 = vmax.f32 %v279_v2, 0.0  ;;  %v354_v54 = vadd.f32 %v1180_v19, %v1457_v27 }
  0xe0   :  { %v281_v5 = vpop.f32.mrf.mxu0  ;;  %1198 = vmatmul.mubr.msk.bf16.gmra.mxu1 %vm460_vm1, %v408_v63  ;;  %v345_v30 = vpop.f32.mrf.mxu1  ;;  %v397_v55 = vmax.f32 %v343_v50, 0.0  ;;  %v416_v63 = vpack.c.bf16 %v396_v58, %v395_v57 }
  0xe1   :  { %v282_v6 = vadd.f32 %v1457_v27, %v281_v5  ;;  %v384_v7 = vmax.f32 %v290_v3, 0.0  ;;  %v346_v28 = vadd.f32 %v1457_v27, %v345_v30  ;;  %v399_v3 = vmax.f32 %v351_v45, 0.0 }
  0xe2   :  { %v1167_v8 = vpop.f32.mrf.mxu0  ;;  %v1183_v42 = vpop.f32.mrf.mxu1  ;;  %v400_v4 = vmax.f32 %v354_v54, 0.0 }
  0xe3   :  { %v382_v11 = vmax.f32 %v282_v6, 0.0  ;;  %v410_v17 = vpack.c.bf16 %v384_v7, %v383_v12  ;;  %v303_v22 = vadd.f32 %v1167_v8, %v1457_v27  ;;  %v398_v56 = vmax.f32 %v346_v28, 0.0 }
  0xe4   :  { %v294_v13 = vpop.f32.mrf.mxu0  ;;  %v358_v48 = vpop.f32.mrf.mxu1  ;;  %v418_v6 = vpack.c.bf16 %v400_v4, %v399_v3  ;;  %v367_v7 = vadd.f32 %v1183_v42, %v1457_v27 }
  0xe5   :  { %v409_v14 = vpack.c.bf16 %v382_v11, %v381_v10  ;;  %v295_v20 = vadd.f32 %v1457_v27, %v294_v13  ;;  %v387_v33 = vmax.f32 %v303_v22, 0.0  ;;  %v417_v60 = vpack.c.bf16 %v398_v56, %v397_v55  ;;  %v1297_v11 = vld [vmem:[%s1623_s5] sm:$0xff]  }
  0xe6   :  { %v1168_v18 = vpop.f32.mrf.mxu0  ;;  %v1184_v53 = vpop.f32.mrf.mxu1  ;;  %v359_v61 = vadd.f32 %v1457_v27, %v358_v48  ;;  %v403_v1 = vmax.f32 %v367_v7, 0.0  ;;  %1231 = vmatprep.subr.bf16.mxu0 %v1297_v11 }
  0xe7   :  { %v306_v21 = vadd.f32 %v1168_v18, %v1457_v27  ;;  %1201 = vmatprep.mubr.msk.bf16.mxu1 %vm460_vm1, %v409_v14  ;;  %v385_v31 = vmax.f32 %v295_v20, 0.0  ;;  %v370_v8 = vadd.f32 %v1184_v53, %v1457_v27  ;;  %1232 = vmatpush3.bf16.msra.mxu0 %v1297_v11 }
  0xe8   :  { %v297_v23 = vpop.f32.mrf.mxu0  ;;  %1202 = vmatmul.mubr.msk.bf16.gmra.mxu1 %vm460_vm1, %v410_v17  ;;  %v361_v59 = vpop.f32.mrf.mxu1  ;;  %v401_v0 = vmax.f32 %v359_v61, 0.0 }
  0xe9   :  { %v298_v25 = vadd.f32 %v1457_v27, %v297_v23  ;;  %v388_v29 = vmax.f32 %v306_v21, 0.0  ;;  %v362_v62 = vadd.f32 %v1457_v27, %v361_v59  ;;  %v404_v9 = vmax.f32 %v370_v8, 0.0  ;;  %v1528_v27 = vld [vmem:[%s1622_s4] ss:$0 sm:$0xff] }
  0xeb   :  { %v386_v32 = vmax.f32 %v298_v25, 0.0  ;;  %v412_v40 = vpack.c.bf16 %v388_v29, %v387_v33  ;;  %v402_v2 = vmax.f32 %v362_v62, 0.0  ;;  %v420_v10 = vpack.c.bf16 %v404_v9, %v403_v1 }
  0xed   :  { %v411_v34 = vpack.c.bf16 %v386_v32, %v385_v31  ;;  %v419_v5 = vpack.c.bf16 %v402_v2, %v401_v0 }
  0xef   :  { %1205 = vmatprep.mubr.msk.bf16.mxu1 %vm460_vm1, %v411_v34 }
  0xf0   :  { %1206 = vmatmul.mubr.msk.bf16.gmra.mxu1 %vm460_vm1, %v412_v40 }
  0xf1   :  { %1209 = vmatprep.mubr.msk.bf16.mxu1 %vm460_vm1, %v413_v35 }
  0xf8   :  { %1210 = vmatmul.mubr.msk.bf16.gmra.mxu1 %vm460_vm1, %v414_v51 }
  0xf9   :  { %1213 = vmatprep.mubr.msk.bf16.mxu1 %vm460_vm1, %v415_v49 }
 0x100   :  { %1214 = vmatmul.mubr.msk.bf16.gmra.mxu1 %vm460_vm1, %v416_v63 }
 0x101   :  { %1217 = vmatprep.mubr.msk.bf16.mxu1 %vm460_vm1, %v417_v60 }
 0x108   :  { %1218 = vmatmul.mubr.msk.bf16.gmra.mxu1 %vm460_vm1, %v418_v6 }
 0x109   :  { %1221 = vmatprep.mubr.msk.bf16.mxu1 %vm460_vm1, %v419_v5 }
 0x110   :  { %1222 = vmatmul.mubr.msk.bf16.gmra.mxu1 %vm460_vm1, %v420_v10 }
 0x198   :  { %v1195_v12 = vpop.f32.mrf.mxu1 }
 0x199   :  { %v552_v17 = vadd.f32 %v1195_v12, %v1528_v27 }
 0x19a   :  { %v543_v13 = vpop.f32.mrf.mxu1 }
 0x19b   :  { %v544_v15 = vadd.f32 %v1528_v27, %v543_v13  ;;  %v672_v24 = vmax.f32 %v552_v17, 0.0 }
 0x19c   :  { %v1196_v14 = vpop.f32.mrf.mxu1 }
 0x19d   :  { %v555_v16 = vadd.f32 %v1196_v14, %v1528_v27  ;;  %v670_v22 = vmax.f32 %v544_v15, 0.0 }
 0x19e   :  { %v546_v18 = vpop.f32.mrf.mxu1 }
 0x19f   :  { %v547_v19 = vadd.f32 %v1528_v27, %v546_v18  ;;  %v673_v20 = vmax.f32 %v555_v16, 0.0 }
 0x1a0   :  { %v1199_v21 = vpop.f32.mrf.mxu1 }
 0x1a1   :  { %v671_v23 = vmax.f32 %v547_v19, 0.0  ;;  %v703_v29 = vpack.c.bf16 %v673_v20, %v672_v24  ;;  %v568_v33 = vadd.f32 %v1199_v21, %v1528_v27 }
 0x1a2   :  { %v559_v25 = vpop.f32.mrf.mxu1 }
 0x1a3   :  { %v702_v26 = vpack.c.bf16 %v671_v23, %v670_v22  ;;  %v560_v31 = vadd.f32 %v1528_v27, %v559_v25  ;;  %v676_v41 = vmax.f32 %v568_v33, 0.0 }
 0x1a4   :  { %v1200_v30 = vpop.f32.mrf.mxu1 }
 0x1a5   :  { %v571_v32 = vadd.f32 %v1200_v30, %v1528_v27  ;;  %1233 = vmatprep.mubr.msk.bf16.mxu0 %vm460_vm1, %v702_v26  ;;  %v674_v39 = vmax.f32 %v560_v31, 0.0 }
 0x1a6   :  { %v562_v34 = vpop.f32.mrf.mxu1  ;;  %1234 = vmatmul.mubr.msk.bf16.vlgmr.msra.gmra.mxu0 %vm460_vm1, %v703_v29 }
 0x1a7   :  { %v563_v35 = vadd.f32 %v1528_v27, %v562_v34  ;;  %v677_v37 = vmax.f32 %v571_v32, 0.0 }
 0x1a8   :  { %v1203_v38 = vpop.f32.mrf.mxu1 }
 0x1a9   :  { %v675_v40 = vmax.f32 %v563_v35, 0.0  ;;  %v705_v44 = vpack.c.bf16 %v677_v37, %v676_v41  ;;  %v584_v49 = vadd.f32 %v1203_v38, %v1528_v27 }
 0x1aa   :  { %v575_v42 = vpop.f32.mrf.mxu1 }
 0x1ab   :  { %v704_v43 = vpack.c.bf16 %v675_v40, %v674_v39  ;;  %v576_v47 = vadd.f32 %v1528_v27, %v575_v42  ;;  %v680_v55 = vmax.f32 %v584_v49, 0.0 }
 0x1ac   :  { %v1204_v46 = vpop.f32.mrf.mxu1 }
 0x1ad   :  { %v587_v48 = vadd.f32 %v1204_v46, %v1528_v27  ;;  %1237 = vmatprep.mubr.msk.bf16.mxu0 %vm460_vm1, %v704_v43  ;;  %v678_v52 = vmax.f32 %v576_v47, 0.0 }
 0x1ae   :  { %v578_v50 = vpop.f32.mrf.mxu1  ;;  %1238 = vmatmul.mubr.msk.bf16.gmra.mxu0 %vm460_vm1, %v705_v44 }
 0x1af   :  { %v579_v28 = vadd.f32 %v1528_v27, %v578_v50  ;;  %v681_v51 = vmax.f32 %v587_v48, 0.0 }
 0x1b0   :  { %v1207_v36 = vpop.f32.mrf.mxu1 }
 0x1b1   :  { %v679_v53 = vmax.f32 %v579_v28, 0.0  ;;  %v707_v58 = vpack.c.bf16 %v681_v51, %v680_v55  ;;  %v600_v62 = vadd.f32 %v1207_v36, %v1528_v27 }
 0x1b2   :  { %v591_v56 = vpop.f32.mrf.mxu1 }
 0x1b3   :  { %v706_v57 = vpack.c.bf16 %v679_v53, %v678_v52  ;;  %v592_v60 = vadd.f32 %v1528_v27, %v591_v56  ;;  %v684_v4 = vmax.f32 %v600_v62, 0.0 }
 0x1b4   :  { %v1208_v59 = vpop.f32.mrf.mxu1 }
 0x1b5   :  { %v603_v61 = vadd.f32 %v1208_v59, %v1528_v27  ;;  %1241 = vmatprep.mubr.msk.bf16.mxu0 %vm460_vm1, %v706_v57  ;;  %v682_v2 = vmax.f32 %v592_v60, 0.0 }
 0x1b6   :  { %v594_v63 = vpop.f32.mrf.mxu1  ;;  %1242 = vmatmul.mubr.msk.bf16.gmra.mxu0 %vm460_vm1, %v707_v58 }
 0x1b7   :  { %v595_v45 = vadd.f32 %v1528_v27, %v594_v63  ;;  %v685_v54 = vmax.f32 %v603_v61, 0.0 }
 0x1b8   :  { %v1211_v0 = vpop.f32.mrf.mxu1 }
 0x1b9   :  { %v683_v3 = vmax.f32 %v595_v45, 0.0  ;;  %v709_v7 = vpack.c.bf16 %v685_v54, %v684_v4  ;;  %v616_v10 = vadd.f32 %v1211_v0, %v1528_v27  ;;  %v1581_v45 = vld [vmem:[%s1624_s6] ss:$0 sm:$0xff]  ;;  %s1320_s6 = smov [#allocation2]  }
 0x1ba   :  { %v607_v5 = vpop.f32.mrf.mxu1  ;;  %s1003_s29 = sshll.u32 %s1320_s6, 4  ;;  %s1004_s29 = int_to_ptr.vmem [resolvable:$true] %s1003_s29 }
 0x1bb   :  { %v708_v6 = vpack.c.bf16 %v683_v3, %v682_v2  ;;  %v608_v1 = vadd.f32 %v1528_v27, %v607_v5  ;;  %v688_v17 = vmax.f32 %v616_v10, 0.0  ;;  %s1298_s30 = scalar_lea.vmem %s1004_s29, 4096  ;;  %p1303_p1 = scmp.lt.s32.totalorder %s1004_s29, %s1004_s29 }
 0x1bc   :  { %v1212_v8 = vpop.f32.mrf.mxu1  ;;  %p1299_p0 = scmp.ne.s32.totalorder %s1004_s29, %s1298_s30  ;;  %p1304_p2 = scmp.lt.s32.totalorder %s1298_s30, %s1298_s30 }
 0x1bd   :  { %v619_v9 = vadd.f32 %v1212_v8, %v1528_v27  ;;  %1245 = vmatprep.mubr.msk.bf16.mxu0 %vm460_vm1, %v708_v6  ;;  %v686_v15 = vmax.f32 %v608_v1, 0.0 }
 0x1be   :  { %v610_v11 = vpop.f32.mrf.mxu1  ;;  %1246 = vmatmul.mubr.msk.bf16.gmra.mxu0 %vm460_vm1, %v709_v7  ;;  %p1305_p3 = por %p1304_p2, %p1303_p1 }
 0x1bf   :  { %v611_v12 = vadd.f32 %v1528_v27, %v610_v11  ;;  %v689_v13 = vmax.f32 %v619_v9, 0.0 }
 0x1c0   :  { %v1215_v14 = vpop.f32.mrf.mxu1  ;;  %p1306_p4 = pnand %p1305_p3, %p1299_p0 }
 0x1c1   :  { %v687_v16 = vmax.f32 %v611_v12, 0.0  ;;  %v711_v20 = vpack.c.bf16 %v689_v13, %v688_v17  ;;  %v632_v24 = vadd.f32 %v1215_v14, %v1528_v27 }
 0x1c2   :  { %v623_v18 = vpop.f32.mrf.mxu1 }
 0x1c3   :  { %v710_v19 = vpack.c.bf16 %v687_v16, %v686_v15  ;;  %v624_v22 = vadd.f32 %v1528_v27, %v623_v18  ;;  %v692_v33 = vmax.f32 %v632_v24, 0.0 }
 0x1c4   :  { %v1216_v21 = vpop.f32.mrf.mxu1 }
 0x1c5   :  { %v635_v23 = vadd.f32 %v1216_v21, %v1528_v27  ;;  %1249 = vmatprep.mubr.msk.bf16.mxu0 %vm460_vm1, %v710_v19  ;;  %v690_v31 = vmax.f32 %v624_v22, 0.0 }
 0x1c6   :  { %v626_v25 = vpop.f32.mrf.mxu1  ;;  %1250 = vmatmul.mubr.msk.bf16.gmra.mxu0 %vm460_vm1, %v711_v20 }
 0x1c7   :  { %v627_v26 = vadd.f32 %v1528_v27, %v626_v25  ;;  %v693_v29 = vmax.f32 %v635_v23, 0.0 }
 0x1c8   :  { %v1219_v30 = vpop.f32.mrf.mxu1 }
 0x1c9   :  { %v691_v32 = vmax.f32 %v627_v26, 0.0  ;;  %v713_v37 = vpack.c.bf16 %v693_v29, %v692_v33  ;;  %v648_v41 = vadd.f32 %v1219_v30, %v1528_v27 }
 0x1ca   :  { %v639_v34 = vpop.f32.mrf.mxu1 }
 0x1cb   :  { %v712_v35 = vpack.c.bf16 %v691_v32, %v690_v31  ;;  %v640_v39 = vadd.f32 %v1528_v27, %v639_v34  ;;  %v696_v49 = vmax.f32 %v648_v41, 0.0 }
 0x1cc   :  { %v1220_v38 = vpop.f32.mrf.mxu1 }
 0x1cd   :  { %v651_v40 = vadd.f32 %v1220_v38, %v1528_v27  ;;  %1253 = vmatprep.mubr.msk.bf16.mxu0 %vm460_vm1, %v712_v35  ;;  %v694_v47 = vmax.f32 %v640_v39, 0.0 }
 0x1ce   :  { %v642_v42 = vpop.f32.mrf.mxu1  ;;  %1254 = vmatmul.mubr.msk.bf16.gmra.mxu0 %vm460_vm1, %v713_v37 }
 0x1cf   :  { %v643_v43 = vadd.f32 %v1528_v27, %v642_v42  ;;  %v697_v44 = vmax.f32 %v651_v40, 0.0 }
 0x1d0   :  { %v1223_v46 = vpop.f32.mrf.mxu1 }
 0x1d1   :  { %v695_v48 = vmax.f32 %v643_v43, 0.0  ;;  %v715_v51 = vpack.c.bf16 %v697_v44, %v696_v49  ;;  %v664_v55 = vadd.f32 %v1223_v46, %v1528_v27 }
 0x1d2   :  { %v655_v50 = vpop.f32.mrf.mxu1 }
 0x1d3   :  { %v714_v28 = vpack.c.bf16 %v695_v48, %v694_v47  ;;  %v656_v52 = vadd.f32 %v1528_v27, %v655_v50  ;;  %v700_v61 = vmax.f32 %v664_v55, 0.0 }
 0x1d4   :  { %v1224_v36 = vpop.f32.mrf.mxu1 }
 0x1d5   :  { %v667_v53 = vadd.f32 %v1224_v36, %v1528_v27  ;;  %1257 = vmatprep.mubr.msk.bf16.mxu0 %vm460_vm1, %v714_v28  ;;  %v698_v59 = vmax.f32 %v656_v52, 0.0 }
 0x1d6   :  { %v658_v56 = vpop.f32.mrf.mxu1  ;;  %1258 = vmatmul.mubr.msk.bf16.gmra.mxu0 %vm460_vm1, %v715_v51 }
 0x1d7   :  { %v659_v57 = vadd.f32 %v1528_v27, %v658_v56  ;;  %v701_v58 = vmax.f32 %v667_v53, 0.0 }
 0x1d9   :  { %v699_v60 = vmax.f32 %v659_v57, 0.0  ;;  %v717_v63 = vpack.c.bf16 %v701_v58, %v700_v61 }
 0x1db   :  { %v716_v62 = vpack.c.bf16 %v699_v60, %v698_v59 }
 0x1dd   :  { %1261 = vmatprep.mubr.msk.bf16.mxu0 %vm460_vm1, %v716_v62 }
 0x1de   :  { %1262 = vmatmul.mubr.msk.bf16.gmra.mxu0 %vm460_vm1, %v717_v63 }
 0x266   :  { %v1235_v54 = vpop.f32.mrf.mxu0 }
 0x267   :  { %v848_v0 = vadd.f32 %v1235_v54, %v1581_v45 }
 0x268   :  { %v839_v2 = vpop.f32.mrf.mxu0 }
 0x269   :  { %968 = vst [vmem:[#allocation2 + $0x10] sm:$0xff] %v848_v0  ;;  %v840_v27 = vadd.f32 %v1581_v45, %v839_v2 }
 0x26a   :  { %v1236_v3 = vpop.f32.mrf.mxu0 }
 0x26b   :  { %966 = vst [vmem:[#allocation2] sm:$0xff] %v840_v27  ;;  %v851_v4 = vadd.f32 %v1236_v3, %v1581_v45 }
 0x26c   :  { %v842_v5 = vpop.f32.mrf.mxu0 }
 0x26d   :  { %969 = vst [vmem:[#allocation2 + $0x18] sm:$0xff] %v851_v4  ;;  %v843_v6 = vadd.f32 %v1581_v45, %v842_v5 }
 0x26e   :  { %v1239_v7 = vpop.f32.mrf.mxu0 }
 0x26f   :  { %967 = vst [vmem:[#allocation2 + $0x8] sm:$0xff] %v843_v6  ;;  %v864_v8 = vadd.f32 %v1239_v7, %v1581_v45 }
 0x270   :  { %v855_v1 = vpop.f32.mrf.mxu0 }
 0x271   :  { %972 = vst [vmem:[#allocation2 + $0x30] sm:$0xff] %v864_v8  ;;  %v856_v9 = vadd.f32 %v1581_v45, %v855_v1 }
 0x272   :  { %v1240_v10 = vpop.f32.mrf.mxu0 }
 0x273   :  { %970 = vst [vmem:[#allocation2 + $0x20] sm:$0xff] %v856_v9  ;;  %v867_v11 = vadd.f32 %v1240_v10, %v1581_v45 }
 0x274   :  { %v858_v12 = vpop.f32.mrf.mxu0 }
 0x275   :  { %973 = vst [vmem:[#allocation2 + $0x38] sm:$0xff] %v867_v11  ;;  %v859_v13 = vadd.f32 %v1581_v45, %v858_v12 }
 0x276   :  { %v1243_v14 = vpop.f32.mrf.mxu0 }
 0x277   :  { %971 = vst [vmem:[#allocation2 + $0x28] sm:$0xff] %v859_v13  ;;  %v880_v15 = vadd.f32 %v1243_v14, %v1581_v45 }
 0x278   :  { %v871_v16 = vpop.f32.mrf.mxu0 }
 0x279   :  { %976 = vst [vmem:[#allocation2 + $0x50] sm:$0xff] %v880_v15  ;;  %v872_v17 = vadd.f32 %v1581_v45, %v871_v16 }
 0x27a   :  { %v1244_v18 = vpop.f32.mrf.mxu0 }
 0x27b   :  { %974 = vst [vmem:[#allocation2 + $0x40] sm:$0xff] %v872_v17  ;;  %v883_v19 = vadd.f32 %v1244_v18, %v1581_v45 }
 0x27c   :  { %v874_v20 = vpop.f32.mrf.mxu0 }
 0x27d   :  { %977 = vst [vmem:[#allocation2 + $0x58] sm:$0xff] %v883_v19  ;;  %v875_v21 = vadd.f32 %v1581_v45, %v874_v20 }
 0x27e   :  { %v1247_v22 = vpop.f32.mrf.mxu0 }
 0x27f   :  { %975 = vst [vmem:[#allocation2 + $0x48] sm:$0xff] %v875_v21  ;;  %v896_v23 = vadd.f32 %v1247_v22, %v1581_v45 }
 0x280   :  { %v887_v24 = vpop.f32.mrf.mxu0 }
 0x281   :  { %980 = vst [vmem:[#allocation2 + $0x70] sm:$0xff] %v896_v23  ;;  %v888_v25 = vadd.f32 %v1581_v45, %v887_v24 }
 0x282   :  { %v1248_v26 = vpop.f32.mrf.mxu0 }
 0x283   :  { %978 = vst [vmem:[#allocation2 + $0x60] sm:$0xff] %v888_v25  ;;  %v899_v29 = vadd.f32 %v1248_v26, %v1581_v45 }
 0x284   :  { %v890_v30 = vpop.f32.mrf.mxu0 }
 0x285   :  { %981 = vst [vmem:[#allocation2 + $0x78] sm:$0xff] %v899_v29  ;;  %v891_v31 = vadd.f32 %v1581_v45, %v890_v30 }
 0x286   :  { %v1251_v32 = vpop.f32.mrf.mxu0 }
 0x287   :  { %979 = vst [vmem:[#allocation2 + $0x68] sm:$0xff] %v891_v31  ;;  %v912_v33 = vadd.f32 %v1251_v32, %v1581_v45 }
 0x288   :  { %v903_v34 = vpop.f32.mrf.mxu0 }
 0x289   :  { %984 = vst [vmem:[#allocation2 + $0x90] sm:$0xff] %v912_v33  ;;  %v904_v35 = vadd.f32 %v1581_v45, %v903_v34 }
 0x28a   :  { %v1252_v37 = vpop.f32.mrf.mxu0 }
 0x28b   :  { %982 = vst [vmem:[#allocation2 + $0x80] sm:$0xff] %v904_v35  ;;  %v915_v38 = vadd.f32 %v1252_v37, %v1581_v45 }
 0x28c   :  { %v906_v39 = vpop.f32.mrf.mxu0 }
 0x28d   :  { %985 = vst [vmem:[#allocation2 + $0x98] sm:$0xff] %v915_v38  ;;  %v907_v40 = vadd.f32 %v1581_v45, %v906_v39 }
 0x28e   :  { %v1255_v41 = vpop.f32.mrf.mxu0 }
 0x28f   :  { %983 = vst [vmem:[#allocation2 + $0x88] sm:$0xff] %v907_v40  ;;  %v928_v42 = vadd.f32 %v1255_v41, %v1581_v45 }
 0x290   :  { %v919_v43 = vpop.f32.mrf.mxu0 }
 0x291   :  { %988 = vst [vmem:[#allocation2 + $0xb0] sm:$0xff] %v928_v42  ;;  %v920_v44 = vadd.f32 %v1581_v45, %v919_v43 }
 0x292   :  { %v1256_v46 = vpop.f32.mrf.mxu0 }
 0x293   :  { %986 = vst [vmem:[#allocation2 + $0xa0] sm:$0xff] %v920_v44  ;;  %v931_v47 = vadd.f32 %v1256_v46, %v1581_v45 }
 0x294   :  { %v922_v48 = vpop.f32.mrf.mxu0 }
 0x295   :  { %989 = vst [vmem:[#allocation2 + $0xb8] sm:$0xff] %v931_v47  ;;  %v923_v49 = vadd.f32 %v1581_v45, %v922_v48 }
 0x296   :  { %v1259_v50 = vpop.f32.mrf.mxu0 }
 0x297   :  { %987 = vst [vmem:[#allocation2 + $0xa8] sm:$0xff] %v923_v49  ;;  %v944_v28 = vadd.f32 %v1259_v50, %v1581_v45 }
 0x298   :  { %v935_v51 = vpop.f32.mrf.mxu0 }
 0x299   :  { %992 = vst [vmem:[#allocation2 + $0xd0] sm:$0xff] %v944_v28  ;;  %v936_v36 = vadd.f32 %v1581_v45, %v935_v51 }
 0x29a   :  { %v1260_v52 = vpop.f32.mrf.mxu0 }
 0x29b   :  { %990 = vst [vmem:[#allocation2 + $0xc0] sm:$0xff] %v936_v36  ;;  %v947_v53 = vadd.f32 %v1260_v52, %v1581_v45 }
 0x29c   :  { %v938_v55 = vpop.f32.mrf.mxu0 }
 0x29d   :  { %993 = vst [vmem:[#allocation2 + $0xd8] sm:$0xff] %v947_v53  ;;  %v939_v56 = vadd.f32 %v1581_v45, %v938_v55 }
 0x29e   :  { %v1263_v57 = vpop.f32.mrf.mxu0 }
 0x29f   :  { %991 = vst [vmem:[#allocation2 + $0xc8] sm:$0xff] %v939_v56  ;;  %v960_v58 = vadd.f32 %v1263_v57, %v1581_v45 }
 0x2a0   :  { %v951_v59 = vpop.f32.mrf.mxu0 }
 0x2a1   :  { %996 = vst [vmem:[#allocation2 + $0xf0] sm:$0xff] %v960_v58  ;;  %v952_v60 = vadd.f32 %v1581_v45, %v951_v59 }
 0x2a2   :  { %v1264_v61 = vpop.f32.mrf.mxu0 }
 0x2a3   :  { %994 = vst [vmem:[#allocation2 + $0xe0] sm:$0xff] %v952_v60  ;;  %v963_v62 = vadd.f32 %v1264_v61, %v1581_v45 }
 0x2a4   :  { %v954_v63 = vpop.f32.mrf.mxu0 }
 0x2a5   :  { %997 = vst [vmem:[#allocation2 + $0xf8] sm:$0xff] %v963_v62  ;;  %v955_v54 = vadd.f32 %v1581_v45, %v954_v63 }
 0x2a7   :  { %995 = vst [vmem:[#allocation2 + $0xe8] sm:$0xff] %v955_v54 }
 0x2a8   :  { %1309 = shalt.err (!%p1306_p4)
}
 0x2a9   :  { %s1321_s8 = smov 128   ;;  %s1322_s9 = smov 8  }
 0x2aa   :  { %1009 = dma.vmem_to_hbm [thread:$0]  %s1004_s29, 4096, %s1625_s7, [#allocation3], %s1321_s8, %s1321_s8, %s1322_s9  }
 0x2ab   :  { %1318 = dma.done.wait [#allocation3], 4096  }
 0x2ac   :  { %1319 = vsyncadd [#allocation3], 4294963200 }
 0x2ad   :  { %1013 = vsyncpa [#allocation3], 1 }

</bundles_post_ra>
